<compile_context>
chip_gen: v7x
topology: tpu7x:2x2x1
jax: 0.10.0
libtpu: 0.0.40
codegen_flags: <defaults>
</compile_context>

<pallas_src>
import functools

import jax
import jax.numpy as jnp
from jax.experimental import pallas as pl
from jax.experimental.pallas import tpu as pltpu


# ----------------------------------------------------------------------------
# helpers
# ----------------------------------------------------------------------------
def _round_up(v, m):
    return ((v + m - 1) // m) * m


def _pad2d(a, rows, cols):
    r, c = a.shape
    return jnp.pad(a, ((0, rows - r), (0, cols - c)))


def _vmem_capacity_bytes():
    """Per-chip VMEM capacity (128 MiB v5e/v6e, 64 MiB v7x); safe fallback."""
    try:
        return int(pltpu.get_tpu_info().vmem_capacity_bytes)
    except Exception:
        return 64 << 20   # conservative: smallest (v7x) VMEM


# ----------------------------------------------------------------------------
# Fused VAE kernel (one batch tile per grid step)
# ----------------------------------------------------------------------------
def _vae_kernel(n_enc, n_dec, conditional, compute_dtype, latent_pad,
                bias_slices, *refs):
    """refs layout:

      inputs : xc [TB, Kin_p] (bf16, = [x | onehot] if conditional),
               (c1h [TB, NL_p] bf16 if conditional), eps [TB, Lp] f32,
               encoder W0..W{n_enc-1}, fused head Wh [H_p, 2*Lp],
               decoder ((W0z, W0c) if conditional else W0), W1.., bias_all [1, sum]
      outputs: recon [TB, Dout_p], means||log_var [TB, 2*Lp], z [TB, Lp]
    """
    recon_ref, mlv_ref, z_ref = refs[-3], refs[-2], refs[-1]
    bias_ref = refs[-4]
    it = iter(refs[:-4])
    bias_it = iter(bias_slices)

    def bias():
        off, width = next(bias_it)
        return bias_ref[:, off:off + width]              # [1, width], f32

    x_ref = next(it)
    c_ref = next(it) if conditional else None
    eps_ref = next(it)

    cdt = compute_dtype

    def matmul(a, w_ref):
        # bf16 operands, f32 accumulation on the MXU.
        return jnp.dot(a, w_ref[...], preferred_element_type=jnp.float32)

    # ---- encoder hidden stack: (Linear -> ReLU)^n_enc (static unroll) ------
    h = x_ref[...]                                       # bf16, lane-dense
    for _ in range(n_enc):
        h = jnp.maximum(matmul(h, next(it)) + bias(), 0.0).astype(cdt)

    # ---- fused means || log_var head (single lane-dense matmul) ------------
    ml = matmul(h, next(it)) + bias()                    # [TB, 2*Lp], f32
    mlv_ref[...] = ml.astype(mlv_ref.dtype)
    means = ml[:, :latent_pad]
    log_var = ml[:, latent_pad:]

    # ---- reparameterize: z = mu + eps * exp(0.5 * log_var) -----------------
    z = means + eps_ref[...] * jnp.exp(0.5 * log_var)
    z_ref[...] = z.astype(z_ref.dtype)

    # ---- decoder: (Linear -> ReLU)* -> Linear -> Sigmoid --------------------
    d = z.astype(cdt)
    for j in range(n_dec):
        if conditional and j == 0:
            acc = matmul(d, next(it)) + matmul(c_ref[...], next(it)) + bias()
        else:
            acc = matmul(d, next(it)) + bias()
        if j + 1 < n_dec:
            d = jnp.maximum(acc, 0.0).astype(cdt)
        else:
            # sigmoid: exp on the EUP, divide via approximate EUP reciprocal.
            recon_ref[...] = pl.reciprocal(1.0 + jnp.exp(-acc),
                                           approx=True).astype(recon_ref.dtype)


# ----------------------------------------------------------------------------
# VAE wrapper (parameter container + pallas_call driver)
# ----------------------------------------------------------------------------
class VAE:
    def __init__(self, encoder_layer_sizes, latent_size, decoder_layer_sizes,
                 im_dim_mul, conditional=False, onehot=True, num_labels=10,
                 key=None, compute_dtype=jnp.bfloat16, pad=128):
        assert isinstance(encoder_layer_sizes, list)
        assert isinstance(decoder_layer_sizes, list)
        assert isinstance(latent_size, int)
        if conditional:
            assert num_labels > 0

        self.latent_size = latent_size
        self.im_dim_mul = im_dim_mul
        self.conditional = conditional
        self.onehot = onehot
        self.num_labels = num_labels
        self.compute_dtype = compute_dtype
        # Only lane alignment (128) is required on all generations; padding
        # K/N beyond 128 just adds zero-valued MXU work and VMEM.
        self.pad = pad

        if key is None:
            key = jax.random.PRNGKey(0)

        def init_linear(k, fan_in, fan_out):
            # torch.nn.Linear default init: U(-1/sqrt(fan_in), 1/sqrt(fan_in)).
            kw, kb = jax.random.split(k)
            bound = 1.0 / float(fan_in) ** 0.5
            w = jax.random.uniform(kw, (fan_in, fan_out), jnp.float32, -bound, bound)
            b = jax.random.uniform(kb, (1, fan_out), jnp.float32, -bound, bound)
            return w, b

        # ----- raw (unpadded, f32) parameters, PyTorch-equivalent math -------
        enc_sizes = list(encoder_layer_sizes)
        if conditional:
            enc_sizes[0] += num_labels
        self.enc_raw = []
        for fi, fo in zip(enc_sizes[:-1], enc_sizes[1:]):
            key, sub = jax.random.split(key)
            self.enc_raw.append(init_linear(sub, fi, fo))
        key, sub = jax.random.split(key)
        self.means_raw = init_linear(sub, enc_sizes[-1], latent_size)
        key, sub = jax.random.split(key)
        self.logvar_raw = init_linear(sub, enc_sizes[-1], latent_size)

        dec_in = latent_size + (num_labels if conditional else 0)
        dec_sizes = [dec_in] + list(decoder_layer_sizes)
        self.dec_raw = []
        for fi, fo in zip(dec_sizes[:-1], dec_sizes[1:]):
            key, sub = jax.random.split(key)
            self.dec_raw.append(init_linear(sub, fi, fo))

        self.n_enc = len(self.enc_raw)
        self.n_dec = len(self.dec_raw)
        self.data_in = encoder_layer_sizes[0]
        self.data_out = decoder_layer_sizes[-1]

        # ----- padded / fused kernel parameters (zero padding is exact) ------
        P = pad
        cdt = compute_dtype
        self.din_p = _round_up(self.data_in, P)
        self.lab_p = _round_up(num_labels, P) if conditional else 0
        self.lat_p = _round_up(latent_size, P)
        self.dout_p = _round_up(self.data_out, P)
        self.kin_p = self.din_p + self.lab_p        # fused [x | onehot] width

        weights, bias_cols, mm_shapes = [], [], []

        enc_out_p = [_round_up(s, P) for s in encoder_layer_sizes[1:]]
        prev_p = self.kin_p
        for i, (w, b) in enumerate(self.enc_raw):
            out_p = enc_out_p[i]
            if conditional and i == 0:
                # Fused first layer: one K=(din_p+lab_p) matmul over [x|onehot].
                wp = jnp.zeros((prev_p, out_p), jnp.float32)
                wp = wp.at[: self.data_in, : w.shape[1]].set(w[: self.data_in])
                wp = wp.at[self.din_p: self.din_p + num_labels,
                           : w.shape[1]].set(w[self.data_in:])
                weights.append(wp.astype(cdt))
            else:
                weights.append(_pad2d(w, prev_p, out_p).astype(cdt))
            bias_cols.append(_pad2d(b, 1, out_p))
            mm_shapes.append((prev_p, out_p))
            prev_p = out_p

        # fused means || log_var head -> one lane-dense [H_p, 2*Lp] matmul
        wm, bm = self.means_raw
        wv, bv = self.logvar_raw
        wh = jnp.zeros((prev_p, 2 * self.lat_p), jnp.float32)
        wh = wh.at[: wm.shape[0], : latent_size].set(wm)
        wh = wh.at[: wv.shape[0], self.lat_p: self.lat_p + latent_size].set(wv)
        bh = jnp.zeros((1, 2 * self.lat_p), jnp.float32)
        bh = bh.at[:, : latent_size].set(bm[0])
        bh = bh.at[:, self.lat_p: self.lat_p + latent_size].set(bv[0])
        weights.append(wh.astype(cdt))
        bias_cols.append(bh)
        mm_shapes.append((prev_p, 2 * self.lat_p))

        dec_out_p = [_round_up(s, P) for s in decoder_layer_sizes]
        prev_p = self.lat_p
        for j, (w, b) in enumerate(self.dec_raw):
            out_p = dec_out_p[j]
            if conditional and j == 0:
                weights.append(_pad2d(w[: latent_size], self.lat_p, out_p).astype(cdt))
                weights.append(_pad2d(w[latent_size:], self.lab_p, out_p).astype(cdt))
                mm_shapes += [(self.lat_p, out_p), (self.lab_p, out_p)]
            else:
                weights.append(_pad2d(w, prev_p, out_p).astype(cdt))
                mm_shapes.append((prev_p, out_p))
            bias_cols.append(_pad2d(b, 1, out_p))
            prev_p = out_p

        # All biases packed into one f32 operand, indexed statically in-kernel.
        offs, off = [], 0
        for bc in bias_cols:
            offs.append((off, bc.shape[1]))
            off += bc.shape[1]
        self.bias_slices = tuple(offs)
        self.bias_all = jnp.concatenate(bias_cols, axis=-1)

        self.weights = weights
        self._mm_shapes = mm_shapes
        self.max_width_p = max([self.kin_p] + enc_out_p + [2 * self.lat_p] + dec_out_p)

    # ------------------------------------------------------------------ glue
    def idx2onehot(self, idx):
        if idx.ndim == 1:
            idx = idx[:, None]
        return (jnp.arange(self.num_labels, dtype=jnp.int32)[None, :]
                == idx.astype(jnp.int32)).astype(jnp.float32)

    def _param_bytes(self):
        return (sum(w.size * w.dtype.itemsize for w in self.weights)
                + self.bias_all.size * self.bias_all.dtype.itemsize)

    def _io_row_bytes(self):
        in_w = self.kin_p + (self.lab_p if self.conditional else 0)
        cdt_bytes = jnp.dtype(self.compute_dtype).itemsize
        return (cdt_bytes * in_w                       # bf16 matmul inputs
                + 4 * self.lat_p                       # eps (f32)
                + 4 * (self.dout_p + 3 * self.lat_p))  # f32 outputs

    def _choose_batch_tile(self, B):
        # Size the batch tile against the *actual* per-chip VMEM (128 MiB on
        # v5e/v6e, 64 MiB on v7x), not a hard-coded smallest-chip budget.
        vmem_cap = _vmem_capacity_bytes()
        budget = int(0.70 * vmem_cap) - 2 * self._param_bytes()
        io_row = self._io_row_bytes()
        inter_row = 6 * self.max_width_p               # f32 acc + bf16 act fudge
        tb = 2048                                      # amortize ~0.35us/step
        while tb > 8 and tb * (2 * io_row + inter_row) > max(budget, 1):
            tb //= 2
        b8 = _round_up(B, 8)
        if b8 >= 16:
            # Keep >=2 grid steps so ("parallel",) can shard over v7x's 2 TCs.
            tb = min(tb, max(8, (b8 // 2) // 8 * 8))
        return max(8, min(tb, b8))

    # --------------------------------------------------------------- forward
    def __call__(self, x, c=None, *, eps=None, rng=None):
        if x.ndim > 2:
            x = x.reshape(-1, self.im_dim_mul)
        x = x.astype(jnp.float32)
        B = x.shape[0]
        cdt = self.compute_dtype

        TB = self._choose_batch_tile(B)
        B_pad = _round_up(B, TB)

        # ---- batch-tiled inputs (matmul operands pre-cast to bf16) ---------
        if self.conditional:
            c1h = self.idx2onehot(c) if self.onehot else c.astype(jnp.float32)
            xc = jnp.concatenate([_pad2d(x, B_pad, self.din_p),
                                  _pad2d(c1h, B_pad, self.lab_p)], axis=-1)
            inputs = [xc.astype(cdt), _pad2d(c1h, B_pad, self.lab_p).astype(cdt)]
        else:
            inputs = [_pad2d(x, B_pad, self.din_p).astype(cdt)]

        if eps is None:
            if rng is None:
                rng = jax.random.PRNGKey(0)
            # TODO(synk): eps could be generated in-kernel (pltpu.prng_seed +
            # pltpu.stateful_normal) to drop this DMA; it would change the RNG
            # stream vs. jax.random, so we keep the explicit f32 input.
            eps = jax.random.normal(rng, (B, self.latent_size), jnp.float32)
        inputs.append(_pad2d(eps.astype(jnp.float32), B_pad, self.lat_p))
        inputs += self.weights
        inputs.append(self.bias_all)

        # ---- BlockSpecs: batch-tiled activations, VMEM-resident params ------
        def row_spec(cols):
            return pl.BlockSpec((TB, cols), lambda i: (i, 0))

        def param_spec(shape, single_buffer):
            idx = lambda i, _n=len(shape): (0,) * _n
            if single_buffer:
                # Constant block index => single-buffer (halves weight VMEM).
                return pl.BlockSpec(shape, idx, pipeline_mode=pl.Buffered(1))
            return pl.BlockSpec(shape, idx)

        out_specs = (row_spec(self.dout_p),
                     row_spec(2 * self.lat_p),
                     row_spec(self.lat_p))
        out_shape = (jax.ShapeDtypeStruct((B_pad, self.dout_p), jnp.float32),
                     jax.ShapeDtypeStruct((B_pad, 2 * self.lat_p), jnp.float32),
                     jax.ShapeDtypeStruct((B_pad, self.lat_p), jnp.float32))

        # ---- VMEM limit: derived from footprint, capped per generation ------
        vmem_cap = _vmem_capacity_bytes()
        vmem_need = (2 * self._param_bytes()
                     + TB * (2 * self._io_row_bytes() + 6 * self.max_width_p))
        vmem_limit = min(int(vmem_need * 1.4) + (4 << 20), int(0.85 * vmem_cap))
        vmem_limit = max(vmem_limit, min(16 << 20, int(0.85 * vmem_cap)))

        # ---- advisory cost estimate -----------------------------------------
        flops = int(sum(2 * B_pad * k * n for k, n in self._mm_shapes))
        transcendentals = int(B_pad * (self.lat_p + 2 * self.dout_p))
        bytes_accessed = int(sum(a.size * a.dtype.itemsize for a in inputs)
                             + 4 * B_pad * (self.dout_p + 3 * self.lat_p))

        kernel = functools.partial(_vae_kernel, self.n_enc, self.n_dec,
                                   self.conditional, cdt, self.lat_p,
                                   self.bias_slices)

        def run(single_buffer_params):
            in_specs = [row_spec(self.kin_p)]
            if self.conditional:
                in_specs.append(row_spec(self.lab_p))
            in_specs.append(row_spec(self.lat_p))
            in_specs += [param_spec(w.shape, single_buffer_params)
                         for w in self.weights]
            in_specs.append(param_spec(self.bias_all.shape, single_buffer_params))
            return pl.pallas_call(
                kernel,
                grid=(B_pad // TB,),
                in_specs=in_specs,
                out_specs=out_specs,
                out_shape=out_shape,
                compiler_params=pltpu.CompilerParams(
                    dimension_semantics=("parallel",),
                    vmem_limit_bytes=vmem_limit),
                cost_estimate=pl.CostEstimate(flops=flops,
                                              transcendentals=transcendentals,
                                              bytes_accessed=bytes_accessed),
            )(*inputs)

        try:
            recon_p, mlv_p, z_p = run(True)
        except Exception:
            # pipeline_mode=pl.Buffered(1) not supported on this JAX/libtpu;
            # fall back to default (double-buffered, still constant-index).
            recon_p, mlv_p, z_p = run(False)

        recon = recon_p[:B, : self.data_out]
        means = mlv_p[:B, : self.latent_size]
        log_var = mlv_p[:B, self.lat_p: self.lat_p + self.latent_size]
        z = z_p[:B, : self.latent_size]
        return recon, means, log_var, z

    # -------------------------------------------------- pure-JAX reference
    def reference_forward(self, x, c=None, *, eps):
        """Same math (bf16 operands, f32 accumulation) on unpadded params."""
        if x.ndim > 2:
            x = x.reshape(-1, self.im_dim_mul)
        x = x.astype(jnp.float32)
        cdt = self.compute_dtype

        def dot(a, w):
            return jnp.dot(a.astype(cdt), w.astype(cdt),
                           preferred_element_type=jnp.float32)

        if self.conditional:
            c1h = self.idx2onehot(c) if self.onehot else c.astype(jnp.float32)
            h = jnp.concatenate([x, c1h], axis=-1)
        else:
            h = x
        for w, b in self.enc_raw:
            h = jnp.maximum(dot(h, w) + b, 0.0)
        means = dot(h, self.means_raw[0]) + self.means_raw[1]
        log_var = dot(h, self.logvar_raw[0]) + self.logvar_raw[1]
        z = means + eps * jnp.exp(0.5 * log_var)
        d = jnp.concatenate([z, c1h], axis=-1) if self.conditional else z
        for j, (w, b) in enumerate(self.dec_raw):
            d = dot(d, w) + b
            d = jnp.maximum(d, 0.0) if j + 1 < self.n_dec else 1.0 / (1.0 + jnp.exp(-d))
        return d, means, log_var, z


# ----------------------------------------------------------------------------
# Demo / self-test
# ----------------------------------------------------------------------------
if __name__ == "__main__":
    key = jax.random.PRNGKey(0)
    k_x, k_c, k_eps, k_init = jax.random.split(key, 4)

    encoder_layer_sizes = [32, 64, 32]
    decoder_layer_sizes = [64, 32]
    latent_size = 8
    im_dim_mul = 32          # x of shape [2, 1, 4, 8] flattens to [2, 32]
    num_labels = 10
    batch = 2

    vae = VAE(encoder_layer_sizes=list(encoder_layer_sizes),
              latent_size=latent_size,
              decoder_layer_sizes=list(decoder_layer_sizes),
              im_dim_mul=im_dim_mul,
              conditional=True, onehot=True, num_labels=num_labels,
              key=k_init)

    x = jax.random.normal(k_x, (batch, 1, 4, 8), jnp.float32)
    c = jax.random.randint(k_c, (batch,), 0, num_labels, jnp.int32)
    eps = jax.random.normal(k_eps, (batch, latent_size), jnp.float32)

    recon, means, log_var, z = vae(x, c, eps=eps)
    jax.block_until_ready((recon, means, log_var, z))

    r_recon, r_means, r_lv, r_z = vae.reference_forward(x, c, eps=eps)

    assert recon.shape == (batch, decoder_layer_sizes[-1])
    assert means.shape == (batch, latent_size)
    assert log_var.shape == (batch, latent_size)
    assert z.shape == (batch, latent_size)
    for got, ref in ((recon, r_recon), (means, r_means),
                     (log_var, r_lv), (z, r_z)):
        assert jnp.allclose(got, ref, atol=1e-2, rtol=1e-2)

    print("KERNEL_OK")
</pallas_src>

<mosaic_0001>
module attributes {stable_mosaic.version = 11 : i64} {
  func.func @_vae_kernel(%arg0: i32, %arg1: memref<8x256xbf16, #tpu.memory_space<vmem>>, %arg2: memref<8x128xbf16, #tpu.memory_space<vmem>>, %arg3: memref<8x128xf32, #tpu.memory_space<vmem>>, %arg4: memref<256x128xbf16, #tpu.memory_space<vmem>>, %arg5: memref<128x128xbf16, #tpu.memory_space<vmem>>, %arg6: memref<128x256xbf16, #tpu.memory_space<vmem>>, %arg7: memref<128x128xbf16, #tpu.memory_space<vmem>>, %arg8: memref<128x128xbf16, #tpu.memory_space<vmem>>, %arg9: memref<128x128xbf16, #tpu.memory_space<vmem>>, %arg10: memref<1x768xf32, #tpu.memory_space<vmem>>, %arg11: memref<8x128xf32, #tpu.memory_space<vmem>>, %arg12: memref<8x256xf32, #tpu.memory_space<vmem>>, %arg13: memref<8x128xf32, #tpu.memory_space<vmem>>) attributes {dimension_semantics = [#tpu.dimension_semantics<parallel>], iteration_bounds = array<i64: 1>, scalar_prefetch = 0 : i64, scratch_operands = 0 : i64, tpu.core_type = #tpu.core_type<tc>, window_params = [{transform_indices = @transform_0, window_bounds = array<i64: 8, 256>}, {transform_indices = @transform_1, window_bounds = array<i64: 8, 128>}, {transform_indices = @transform_2, window_bounds = array<i64: 8, 128>}, {pipeline_mode = #tpu.pipeline_mode<synchronous>, transform_indices = @transform_3, window_bounds = array<i64: 256, 128>}, {pipeline_mode = #tpu.pipeline_mode<synchronous>, transform_indices = @transform_4, window_bounds = array<i64: 128, 128>}, {pipeline_mode = #tpu.pipeline_mode<synchronous>, transform_indices = @transform_5, window_bounds = array<i64: 128, 256>}, {pipeline_mode = #tpu.pipeline_mode<synchronous>, transform_indices = @transform_6, window_bounds = array<i64: 128, 128>}, {pipeline_mode = #tpu.pipeline_mode<synchronous>, transform_indices = @transform_7, window_bounds = array<i64: 128, 128>}, {pipeline_mode = #tpu.pipeline_mode<synchronous>, transform_indices = @transform_8, window_bounds = array<i64: 128, 128>}, {pipeline_mode = #tpu.pipeline_mode<synchronous>, transform_indices = @transform_9, window_bounds = array<i64: 1, 768>}, {transform_indices = @transform_10, window_bounds = array<i64: 8, 128>}, {transform_indices = @transform_11, window_bounds = array<i64: 8, 256>}, {transform_indices = @transform_12, window_bounds = array<i64: 8, 128>}]} {
    %c0 = arith.constant 0 : index
    %c0_0 = arith.constant 0 : index
    %0 = vector.load %arg1[%c0, %c0_0] : memref<8x256xbf16, #tpu.memory_space<vmem>>, vector<8x256xbf16>
    %c0_1 = arith.constant 0 : index
    %c0_2 = arith.constant 0 : index
    %1 = vector.load %arg4[%c0_1, %c0_2] : memref<256x128xbf16, #tpu.memory_space<vmem>>, vector<256x128xbf16>
    %cst = arith.constant dense<0.000000e+00> : vector<8x128xf32>
    %2 = tpu.matmul %0, %1, %cst {dimension_numbers = #tpu.dot_dimension_numbers<[1], [0], [0], [1], [0, 0, 1, 1], [], []>} : vector<8x256xbf16>, vector<256x128xbf16>, vector<8x128xf32> -> vector<8x128xf32>
    %c0_3 = arith.constant 0 : index
    %c0_4 = arith.constant 0 : index
    %3 = vector.load %arg10[%c0_3, %c0_4] : memref<1x768xf32, #tpu.memory_space<vmem>>, vector<1x128xf32>
    %4 = vector.broadcast %3 : vector<1x128xf32> to vector<8x128xf32>
    %5 = arith.addf %2, %4 : vector<8x128xf32>
    %cst_5 = arith.constant 0.000000e+00 : f32
    %6 = vector.broadcast %cst_5 : f32 to vector<8x128xf32>
    %7 = arith.maximumf %5, %6 : vector<8x128xf32>
    %8 = arith.truncf %7 : vector<8x128xf32> to vector<8x128xbf16>
    %c0_6 = arith.constant 0 : index
    %c0_7 = arith.constant 0 : index
    %9 = vector.load %arg5[%c0_6, %c0_7] : memref<128x128xbf16, #tpu.memory_space<vmem>>, vector<128x128xbf16>
    %cst_8 = arith.constant dense<0.000000e+00> : vector<8x128xf32>
    %10 = tpu.matmul %8, %9, %cst_8 {dimension_numbers = #tpu.dot_dimension_numbers<[1], [0], [0], [1], [0, 0, 1, 1], [], []>} : vector<8x128xbf16>, vector<128x128xbf16>, vector<8x128xf32> -> vector<8x128xf32>
    %c0_9 = arith.constant 0 : index
    %c128 = arith.constant 128 : index
    %11 = vector.load %arg10[%c0_9, %c128] : memref<1x768xf32, #tpu.memory_space<vmem>>, vector<1x128xf32>
    %12 = vector.broadcast %11 : vector<1x128xf32> to vector<8x128xf32>
    %13 = arith.addf %10, %12 : vector<8x128xf32>
    %cst_10 = arith.constant 0.000000e+00 : f32
    %14 = vector.broadcast %cst_10 : f32 to vector<8x128xf32>
    %15 = arith.maximumf %13, %14 : vector<8x128xf32>
    %16 = arith.truncf %15 : vector<8x128xf32> to vector<8x128xbf16>
    %c0_11 = arith.constant 0 : index
    %c0_12 = arith.constant 0 : index
    %17 = vector.load %arg6[%c0_11, %c0_12] : memref<128x256xbf16, #tpu.memory_space<vmem>>, vector<128x256xbf16>
    %cst_13 = arith.constant dense<0.000000e+00> : vector<8x256xf32>
    %18 = tpu.matmul %16, %17, %cst_13 {dimension_numbers = #tpu.dot_dimension_numbers<[1], [0], [0], [1], [0, 0, 1, 1], [], []>} : vector<8x128xbf16>, vector<128x256xbf16>, vector<8x256xf32> -> vector<8x256xf32>
    %c0_14 = arith.constant 0 : index
    %c256 = arith.constant 256 : index
    %19 = vector.load %arg10[%c0_14, %c256] : memref<1x768xf32, #tpu.memory_space<vmem>>, vector<1x256xf32>
    %20 = vector.broadcast %19 : vector<1x256xf32> to vector<8x256xf32>
    %21 = arith.addf %18, %20 : vector<8x256xf32>
    %c0_15 = arith.constant 0 : index
    %c0_16 = arith.constant 0 : index
    %22 = vector.load %arg12[%c0_15, %c0_16] : memref<8x256xf32, #tpu.memory_space<vmem>>, vector<8x256xf32>
    tpu.vector_store %arg12[%c0_15, %c0_16], %21 {strides = array<i32>} : memref<8x256xf32, #tpu.memory_space<vmem>>, vector<8x256xf32>,
    %23 = vector.extract_strided_slice %21 {offsets = [0, 0], sizes = [8, 128], strides = [1, 1]} : vector<8x256xf32> to vector<8x128xf32>
    %24 = vector.extract_strided_slice %21 {offsets = [0, 128], sizes = [8, 128], strides = [1, 1]} : vector<8x256xf32> to vector<8x128xf32>
    %c0_17 = arith.constant 0 : index
    %c0_18 = arith.constant 0 : index
    %25 = vector.load %arg3[%c0_17, %c0_18] : memref<8x128xf32, #tpu.memory_space<vmem>>, vector<8x128xf32>
    %cst_19 = arith.constant 5.000000e-01 : f32
    %26 = vector.broadcast %cst_19 : f32 to vector<8x128xf32>
    %27 = arith.mulf %26, %24 : vector<8x128xf32>
    %28 = math.exp %27 : vector<8x128xf32>
    %29 = arith.mulf %25, %28 : vector<8x128xf32>
    %30 = arith.addf %23, %29 : vector<8x128xf32>
    %c0_20 = arith.constant 0 : index
    %c0_21 = arith.constant 0 : index
    %31 = vector.load %arg13[%c0_20, %c0_21] : memref<8x128xf32, #tpu.memory_space<vmem>>, vector<8x128xf32>
    tpu.vector_store %arg13[%c0_20, %c0_21], %30 {strides = array<i32>} : memref<8x128xf32, #tpu.memory_space<vmem>>, vector<8x128xf32>,
    %32 = arith.truncf %30 : vector<8x128xf32> to vector<8x128xbf16>
    %c0_22 = arith.constant 0 : index
    %c0_23 = arith.constant 0 : index
    %33 = vector.load %arg7[%c0_22, %c0_23] : memref<128x128xbf16, #tpu.memory_space<vmem>>, vector<128x128xbf16>
    %cst_24 = arith.constant dense<0.000000e+00> : vector<8x128xf32>
    %34 = tpu.matmul %32, %33, %cst_24 {dimension_numbers = #tpu.dot_dimension_numbers<[1], [0], [0], [1], [0, 0, 1, 1], [], []>} : vector<8x128xbf16>, vector<128x128xbf16>, vector<8x128xf32> -> vector<8x128xf32>
    %c0_25 = arith.constant 0 : index
    %c0_26 = arith.constant 0 : index
    %35 = vector.load %arg2[%c0_25, %c0_26] : memref<8x128xbf16, #tpu.memory_space<vmem>>, vector<8x128xbf16>
    %c0_27 = arith.constant 0 : index
    %c0_28 = arith.constant 0 : index
    %36 = vector.load %arg8[%c0_27, %c0_28] : memref<128x128xbf16, #tpu.memory_space<vmem>>, vector<128x128xbf16>
    %cst_29 = arith.constant dense<0.000000e+00> : vector<8x128xf32>
    %37 = tpu.matmul %35, %36, %cst_29 {dimension_numbers = #tpu.dot_dimension_numbers<[1], [0], [0], [1], [0, 0, 1, 1], [], []>} : vector<8x128xbf16>, vector<128x128xbf16>, vector<8x128xf32> -> vector<8x128xf32>
    %38 = arith.addf %34, %37 : vector<8x128xf32>
    %c0_30 = arith.constant 0 : index
    %c512 = arith.constant 512 : index
    %39 = vector.load %arg10[%c0_30, %c512] : memref<1x768xf32, #tpu.memory_space<vmem>>, vector<1x128xf32>
    %40 = vector.broadcast %39 : vector<1x128xf32> to vector<8x128xf32>
    %41 = arith.addf %38, %40 : vector<8x128xf32>
    %cst_31 = arith.constant 0.000000e+00 : f32
    %42 = vector.broadcast %cst_31 : f32 to vector<8x128xf32>
    %43 = arith.maximumf %41, %42 : vector<8x128xf32>
    %44 = arith.truncf %43 : vector<8x128xf32> to vector<8x128xbf16>
    %c0_32 = arith.constant 0 : index
    %c0_33 = arith.constant 0 : index
    %45 = vector.load %arg9[%c0_32, %c0_33] : memref<128x128xbf16, #tpu.memory_space<vmem>>, vector<128x128xbf16>
    %cst_34 = arith.constant dense<0.000000e+00> : vector<8x128xf32>
    %46 = tpu.matmul %44, %45, %cst_34 {dimension_numbers = #tpu.dot_dimension_numbers<[1], [0], [0], [1], [0, 0, 1, 1], [], []>} : vector<8x128xbf16>, vector<128x128xbf16>, vector<8x128xf32> -> vector<8x128xf32>
    %c0_35 = arith.constant 0 : index
    %c640 = arith.constant 640 : index
    %47 = vector.load %arg10[%c0_35, %c640] : memref<1x768xf32, #tpu.memory_space<vmem>>, vector<1x128xf32>
    %48 = vector.broadcast %47 : vector<1x128xf32> to vector<8x128xf32>
    %49 = arith.addf %46, %48 : vector<8x128xf32>
    %cst_36 = arith.constant 0.000000e+00 : f32
    %50 = vector.broadcast %cst_36 : f32 to vector<8x128xf32>
    %51 = arith.subf %50, %49 : vector<8x128xf32>
    %52 = math.exp %51 : vector<8x128xf32>
    %cst_37 = arith.constant 1.000000e+00 : f32
    %53 = vector.broadcast %cst_37 : f32 to vector<8x128xf32>
    %54 = arith.addf %53, %52 : vector<8x128xf32>
    %55 = tpu.reciprocal %54 {approx = true} : vector<8x128xf32> -> vector<8x128xf32>
    %c0_38 = arith.constant 0 : index
    %c0_39 = arith.constant 0 : index
    %56 = vector.load %arg11[%c0_38, %c0_39] : memref<8x128xf32, #tpu.memory_space<vmem>>, vector<8x128xf32>
    tpu.vector_store %arg11[%c0_38, %c0_39], %55 {strides = array<i32>} : memref<8x128xf32, #tpu.memory_space<vmem>>, vector<8x128xf32>,
    return
  }
  func.func @transform_0(%arg0: i32) -> (i32, i32) {
    %c0_i32 = arith.constant 0 : i32
    %c0_i32_0 = arith.constant 0 : i32
    return %arg0, %c0_i32 : i32, i32
  }
  func.func @transform_1(%arg0: i32) -> (i32, i32) {
    %c0_i32 = arith.constant 0 : i32
    %c0_i32_0 = arith.constant 0 : i32
    return %arg0, %c0_i32 : i32, i32
  }
  func.func @transform_2(%arg0: i32) -> (i32, i32) {
    %c0_i32 = arith.constant 0 : i32
    %c0_i32_0 = arith.constant 0 : i32
    return %arg0, %c0_i32 : i32, i32
  }
  func.func @transform_3(%arg0: i32) -> (i32, i32) {
    %c0_i32 = arith.constant 0 : i32
    %c0_i32_0 = arith.constant 0 : i32
    %c0_i32_1 = arith.constant 0 : i32
    return %c0_i32, %c0_i32_0 : i32, i32
  }
  func.func @transform_4(%arg0: i32) -> (i32, i32) {
    %c0_i32 = arith.constant 0 : i32
    %c0_i32_0 = arith.constant 0 : i32
    %c0_i32_1 = arith.constant 0 : i32
    return %c0_i32, %c0_i32_0 : i32, i32
  }
  func.func @transform_5(%arg0: i32) -> (i32, i32) {
    %c0_i32 = arith.constant 0 : i32
    %c0_i32_0 = arith.constant 0 : i32
    %c0_i32_1 = arith.constant 0 : i32
    return %c0_i32, %c0_i32_0 : i32, i32
  }
  func.func @transform_6(%arg0: i32) -> (i32, i32) {
    %c0_i32 = arith.constant 0 : i32
    %c0_i32_0 = arith.constant 0 : i32
    %c0_i32_1 = arith.constant 0 : i32
    return %c0_i32, %c0_i32_0 : i32, i32
  }
  func.func @transform_7(%arg0: i32) -> (i32, i32) {
    %c0_i32 = arith.constant 0 : i32
    %c0_i32_0 = arith.constant 0 : i32
    %c0_i32_1 = arith.constant 0 : i32
    return %c0_i32, %c0_i32_0 : i32, i32
  }
  func.func @transform_8(%arg0: i32) -> (i32, i32) {
    %c0_i32 = arith.constant 0 : i32
    %c0_i32_0 = arith.constant 0 : i32
    %c0_i32_1 = arith.constant 0 : i32
    return %c0_i32, %c0_i32_0 : i32, i32
  }
  func.func @transform_9(%arg0: i32) -> (i32, i32) {
    %c0_i32 = arith.constant 0 : i32
    %c0_i32_0 = arith.constant 0 : i32
    %c0_i32_1 = arith.constant 0 : i32
    return %c0_i32, %c0_i32_0 : i32, i32
  }
  func.func @transform_10(%arg0: i32) -> (i32, i32) {
    %c0_i32 = arith.constant 0 : i32
    %c0_i32_0 = arith.constant 0 : i32
    return %arg0, %c0_i32 : i32, i32
  }
  func.func @transform_11(%arg0: i32) -> (i32, i32) {
    %c0_i32 = arith.constant 0 : i32
    %c0_i32_0 = arith.constant 0 : i32
    return %arg0, %c0_i32 : i32, i32
  }
  func.func @transform_12(%arg0: i32) -> (i32, i32) {
    %c0_i32 = arith.constant 0 : i32
    %c0_i32_0 = arith.constant 0 : i32
    return %arg0, %c0_i32 : i32, i32
  }
}

module attributes {stable_mosaic.version = 11 : i64} {
  func.func @_vae_kernel(%arg0: i32, %arg1: memref<8x256xbf16, #tpu.memory_space<vmem>>, %arg2: memref<8x128xbf16, #tpu.memory_space<vmem>>, %arg3: memref<8x128xf32, #tpu.memory_space<vmem>>, %arg4: memref<256x128xbf16, #tpu.memory_space<vmem>>, %arg5: memref<128x128xbf16, #tpu.memory_space<vmem>>, %arg6: memref<128x256xbf16, #tpu.memory_space<vmem>>, %arg7: memref<128x128xbf16, #tpu.memory_space<vmem>>, %arg8: memref<128x128xbf16, #tpu.memory_space<vmem>>, %arg9: memref<128x128xbf16, #tpu.memory_space<vmem>>, %arg10: memref<1x768xf32, #tpu.memory_space<vmem>>, %arg11: memref<8x128xf32, #tpu.memory_space<vmem>>, %arg12: memref<8x256xf32, #tpu.memory_space<vmem>>, %arg13: memref<8x128xf32, #tpu.memory_space<vmem>>) attributes {dimension_semantics = [#tpu.dimension_semantics<parallel>], iteration_bounds = array<i64: 1>, scalar_prefetch = 0 : i64, scratch_operands = 0 : i64, tpu.core_type = #tpu.core_type<tc>, window_params = [{transform_indices = @transform_0, window_bounds = array<i64: 8, 256>}, {transform_indices = @transform_1, window_bounds = array<i64: 8, 128>}, {transform_indices = @transform_2, window_bounds = array<i64: 8, 128>}, {pipeline_mode = #tpu.pipeline_mode<synchronous>, transform_indices = @transform_3, window_bounds = array<i64: 256, 128>}, {pipeline_mode = #tpu.pipeline_mode<synchronous>, transform_indices = @transform_4, window_bounds = array<i64: 128, 128>}, {pipeline_mode = #tpu.pipeline_mode<synchronous>, transform_indices = @transform_5, window_bounds = array<i64: 128, 256>}, {pipeline_mode = #tpu.pipeline_mode<synchronous>, transform_indices = @transform_6, window_bounds = array<i64: 128, 128>}, {pipeline_mode = #tpu.pipeline_mode<synchronous>, transform_indices = @transform_7, window_bounds = array<i64: 128, 128>}, {pipeline_mode = #tpu.pipeline_mode<synchronous>, transform_indices = @transform_8, window_bounds = array<i64: 128, 128>}, {pipeline_mode = #tpu.pipeline_mode<synchronous>, transform_indices = @transform_9, window_bounds = array<i64: 1, 768>}, {transform_indices = @transform_10, window_bounds = array<i64: 8, 128>}, {transform_indices = @transform_11, window_bounds = array<i64: 8, 256>}, {transform_indices = @transform_12, window_bounds = array<i64: 8, 128>}]} {
    %c0 = arith.constant 0 : index
    %c0_0 = arith.constant 0 : index
    %0 = vector.load %arg1[%c0, %c0_0] : memref<8x256xbf16, #tpu.memory_space<vmem>>, vector<8x256xbf16>
    %c0_1 = arith.constant 0 : index
    %c0_2 = arith.constant 0 : index
    %1 = vector.load %arg4[%c0_1, %c0_2] : memref<256x128xbf16, #tpu.memory_space<vmem>>, vector<256x128xbf16>
    %cst = arith.constant dense<0.000000e+00> : vector<8x128xf32>
    %2 = tpu.matmul %0, %1, %cst {dimension_numbers = #tpu.dot_dimension_numbers<[1], [0], [0], [1], [0, 0, 1, 1], [], []>} : vector<8x256xbf16>, vector<256x128xbf16>, vector<8x128xf32> -> vector<8x128xf32>
    %c0_3 = arith.constant 0 : index
    %c0_4 = arith.constant 0 : index
    %3 = vector.load %arg10[%c0_3, %c0_4] : memref<1x768xf32, #tpu.memory_space<vmem>>, vector<1x128xf32>
    %4 = vector.broadcast %3 : vector<1x128xf32> to vector<8x128xf32>
    %5 = arith.addf %2, %4 : vector<8x128xf32>
    %cst_5 = arith.constant 0.000000e+00 : f32
    %6 = vector.broadcast %cst_5 : f32 to vector<8x128xf32>
    %7 = arith.maximumf %5, %6 : vector<8x128xf32>
    %8 = arith.truncf %7 : vector<8x128xf32> to vector<8x128xbf16>
    %c0_6 = arith.constant 0 : index
    %c0_7 = arith.constant 0 : index
    %9 = vector.load %arg5[%c0_6, %c0_7] : memref<128x128xbf16, #tpu.memory_space<vmem>>, vector<128x128xbf16>
    %cst_8 = arith.constant dense<0.000000e+00> : vector<8x128xf32>
    %10 = tpu.matmul %8, %9, %cst_8 {dimension_numbers = #tpu.dot_dimension_numbers<[1], [0], [0], [1], [0, 0, 1, 1], [], []>} : vector<8x128xbf16>, vector<128x128xbf16>, vector<8x128xf32> -> vector<8x128xf32>
    %c0_9 = arith.constant 0 : index
    %c128 = arith.constant 128 : index
    %11 = vector.load %arg10[%c0_9, %c128] : memref<1x768xf32, #tpu.memory_space<vmem>>, vector<1x128xf32>
    %12 = vector.broadcast %11 : vector<1x128xf32> to vector<8x128xf32>
    %13 = arith.addf %10, %12 : vector<8x128xf32>
    %cst_10 = arith.constant 0.000000e+00 : f32
    %14 = vector.broadcast %cst_10 : f32 to vector<8x128xf32>
    %15 = arith.maximumf %13, %14 : vector<8x128xf32>
    %16 = arith.truncf %15 : vector<8x128xf32> to vector<8x128xbf16>
    %c0_11 = arith.constant 0 : index
    %c0_12 = arith.constant 0 : index
    %17 = vector.load %arg6[%c0_11, %c0_12] : memref<128x256xbf16, #tpu.memory_space<vmem>>, vector<128x256xbf16>
    %cst_13 = arith.constant dense<0.000000e+00> : vector<8x256xf32>
    %18 = tpu.matmul %16, %17, %cst_13 {dimension_numbers = #tpu.dot_dimension_numbers<[1], [0], [0], [1], [0, 0, 1, 1], [], []>} : vector<8x128xbf16>, vector<128x256xbf16>, vector<8x256xf32> -> vector<8x256xf32>
    %c0_14 = arith.constant 0 : index
    %c256 = arith.constant 256 : index
    %19 = vector.load %arg10[%c0_14, %c256] : memref<1x768xf32, #tpu.memory_space<vmem>>, vector<1x256xf32>
    %20 = vector.broadcast %19 : vector<1x256xf32> to vector<8x256xf32>
    %21 = arith.addf %18, %20 : vector<8x256xf32>
    %c0_15 = arith.constant 0 : index
    %c0_16 = arith.constant 0 : index
    %22 = vector.load %arg12[%c0_15, %c0_16] : memref<8x256xf32, #tpu.memory_space<vmem>>, vector<8x256xf32>
    tpu.vector_store %arg12[%c0_15, %c0_16], %21 {strides = array<i32>} : memref<8x256xf32, #tpu.memory_space<vmem>>, vector<8x256xf32>,
    %23 = vector.extract_strided_slice %21 {offsets = [0, 0], sizes = [8, 128], strides = [1, 1]} : vector<8x256xf32> to vector<8x128xf32>
    %24 = vector.extract_strided_slice %21 {offsets = [0, 128], sizes = [8, 128], strides = [1, 1]} : vector<8x256xf32> to vector<8x128xf32>
    %c0_17 = arith.constant 0 : index
    %c0_18 = arith.constant 0 : index
    %25 = vector.load %arg3[%c0_17, %c0_18] : memref<8x128xf32, #tpu.memory_space<vmem>>, vector<8x128xf32>
    %cst_19 = arith.constant 5.000000e-01 : f32
    %26 = vector.broadcast %cst_19 : f32 to vector<8x128xf32>
    %27 = arith.mulf %26, %24 : vector<8x128xf32>
    %28 = math.exp %27 : vector<8x128xf32>
    %29 = arith.mulf %25, %28 : vector<8x128xf32>
    %30 = arith.addf %23, %29 : vector<8x128xf32>
    %c0_20 = arith.constant 0 : index
    %c0_21 = arith.constant 0 : index
    %31 = vector.load %arg13[%c0_20, %c0_21] : memref<8x128xf32, #tpu.memory_space<vmem>>, vector<8x128xf32>
    tpu.vector_store %arg13[%c0_20, %c0_21], %30 {strides = array<i32>} : memref<8x128xf32, #tpu.memory_space<vmem>>, vector<8x128xf32>,
    %32 = arith.truncf %30 : vector<8x128xf32> to vector<8x128xbf16>
    %c0_22 = arith.constant 0 : index
    %c0_23 = arith.constant 0 : index
    %33 = vector.load %arg7[%c0_22, %c0_23] : memref<128x128xbf16, #tpu.memory_space<vmem>>, vector<128x128xbf16>
    %cst_24 = arith.constant dense<0.000000e+00> : vector<8x128xf32>
    %34 = tpu.matmul %32, %33, %cst_24 {dimension_numbers = #tpu.dot_dimension_numbers<[1], [0], [0], [1], [0, 0, 1, 1], [], []>} : vector<8x128xbf16>, vector<128x128xbf16>, vector<8x128xf32> -> vector<8x128xf32>
    %c0_25 = arith.constant 0 : index
    %c0_26 = arith.constant 0 : index
    %35 = vector.load %arg2[%c0_25, %c0_26] : memref<8x128xbf16, #tpu.memory_space<vmem>>, vector<8x128xbf16>
    %c0_27 = arith.constant 0 : index
    %c0_28 = arith.constant 0 : index
    %36 = vector.load %arg8[%c0_27, %c0_28] : memref<128x128xbf16, #tpu.memory_space<vmem>>, vector<128x128xbf16>
    %cst_29 = arith.constant dense<0.000000e+00> : vector<8x128xf32>
    %37 = tpu.matmul %35, %36, %cst_29 {dimension_numbers = #tpu.dot_dimension_numbers<[1], [0], [0], [1], [0, 0, 1, 1], [], []>} : vector<8x128xbf16>, vector<128x128xbf16>, vector<8x128xf32> -> vector<8x128xf32>
    %38 = arith.addf %34, %37 : vector<8x128xf32>
    %c0_30 = arith.constant 0 : index
    %c512 = arith.constant 512 : index
    %39 = vector.load %arg10[%c0_30, %c512] : memref<1x768xf32, #tpu.memory_space<vmem>>, vector<1x128xf32>
    %40 = vector.broadcast %39 : vector<1x128xf32> to vector<8x128xf32>
    %41 = arith.addf %38, %40 : vector<8x128xf32>
    %cst_31 = arith.constant 0.000000e+00 : f32
    %42 = vector.broadcast %cst_31 : f32 to vector<8x128xf32>
    %43 = arith.maximumf %41, %42 : vector<8x128xf32>
    %44 = arith.truncf %43 : vector<8x128xf32> to vector<8x128xbf16>
    %c0_32 = arith.constant 0 : index
    %c0_33 = arith.constant 0 : index
    %45 = vector.load %arg9[%c0_32, %c0_33] : memref<128x128xbf16, #tpu.memory_space<vmem>>, vector<128x128xbf16>
    %cst_34 = arith.constant dense<0.000000e+00> : vector<8x128xf32>
    %46 = tpu.matmul %44, %45, %cst_34 {dimension_numbers = #tpu.dot_dimension_numbers<[1], [0], [0], [1], [0, 0, 1, 1], [], []>} : vector<8x128xbf16>, vector<128x128xbf16>, vector<8x128xf32> -> vector<8x128xf32>
    %c0_35 = arith.constant 0 : index
    %c640 = arith.constant 640 : index
    %47 = vector.load %arg10[%c0_35, %c640] : memref<1x768xf32, #tpu.memory_space<vmem>>, vector<1x128xf32>
    %48 = vector.broadcast %47 : vector<1x128xf32> to vector<8x128xf32>
    %49 = arith.addf %46, %48 : vector<8x128xf32>
    %cst_36 = arith.constant 0.000000e+00 : f32
    %50 = vector.broadcast %cst_36 : f32 to vector<8x128xf32>
    %51 = arith.subf %50, %49 : vector<8x128xf32>
    %52 = math.exp %51 : vector<8x128xf32>
    %cst_37 = arith.constant 1.000000e+00 : f32
    %53 = vector.broadcast %cst_37 : f32 to vector<8x128xf32>
    %54 = arith.addf %53, %52 : vector<8x128xf32>
    %55 = tpu.reciprocal %54 {approx = true} : vector<8x128xf32> -> vector<8x128xf32>
    %c0_38 = arith.constant 0 : index
    %c0_39 = arith.constant 0 : index
    %56 = vector.load %arg11[%c0_38, %c0_39] : memref<8x128xf32, #tpu.memory_space<vmem>>, vector<8x128xf32>
    tpu.vector_store %arg11[%c0_38, %c0_39], %55 {strides = array<i32>} : memref<8x128xf32, #tpu.memory_space<vmem>>, vector<8x128xf32>,
    return
  }
  func.func @transform_0(%arg0: i32) -> (i32, i32) {
    %c0_i32 = arith.constant 0 : i32
    %c0_i32_0 = arith.constant 0 : i32
    return %arg0, %c0_i32 : i32, i32
  }
  func.func @transform_1(%arg0: i32) -> (i32, i32) {
    %c0_i32 = arith.constant 0 : i32
    %c0_i32_0 = arith.constant 0 : i32
    return %arg0, %c0_i32 : i32, i32
  }
  func.func @transform_2(%arg0: i32) -> (i32, i32) {
    %c0_i32 = arith.constant 0 : i32
    %c0_i32_0 = arith.constant 0 : i32
    return %arg0, %c0_i32 : i32, i32
  }
  func.func @transform_3(%arg0: i32) -> (i32, i32) {
    %c0_i32 = arith.constant 0 : i32
    %c0_i32_0 = arith.constant 0 : i32
    %c0_i32_1 = arith.constant 0 : i32
    return %c0_i32, %c0_i32_0 : i32, i32
  }
  func.func @transform_4(%arg0: i32) -> (i32, i32) {
    %c0_i32 = arith.constant 0 : i32
    %c0_i32_0 = arith.constant 0 : i32
    %c0_i32_1 = arith.constant 0 : i32
    return %c0_i32, %c0_i32_0 : i32, i32
  }
  func.func @transform_5(%arg0: i32) -> (i32, i32) {
    %c0_i32 = arith.constant 0 : i32
    %c0_i32_0 = arith.constant 0 : i32
    %c0_i32_1 = arith.constant 0 : i32
    return %c0_i32, %c0_i32_0 : i32, i32
  }
  func.func @transform_6(%arg0: i32) -> (i32, i32) {
    %c0_i32 = arith.constant 0 : i32
    %c0_i32_0 = arith.constant 0 : i32
    %c0_i32_1 = arith.constant 0 : i32
    return %c0_i32, %c0_i32_0 : i32, i32
  }
  func.func @transform_7(%arg0: i32) -> (i32, i32) {
    %c0_i32 = arith.constant 0 : i32
    %c0_i32_0 = arith.constant 0 : i32
    %c0_i32_1 = arith.constant 0 : i32
    return %c0_i32, %c0_i32_0 : i32, i32
  }
  func.func @transform_8(%arg0: i32) -> (i32, i32) {
    %c0_i32 = arith.constant 0 : i32
    %c0_i32_0 = arith.constant 0 : i32
    %c0_i32_1 = arith.constant 0 : i32
    return %c0_i32, %c0_i32_0 : i32, i32
  }
  func.func @transform_9(%arg0: i32) -> (i32, i32) {
    %c0_i32 = arith.constant 0 : i32
    %c0_i32_0 = arith.constant 0 : i32
    %c0_i32_1 = arith.constant 0 : i32
    return %c0_i32, %c0_i32_0 : i32, i32
  }
  func.func @transform_10(%arg0: i32) -> (i32, i32) {
    %c0_i32 = arith.constant 0 : i32
    %c0_i32_0 = arith.constant 0 : i32
    return %arg0, %c0_i32 : i32, i32
  }
  func.func @transform_11(%arg0: i32) -> (i32, i32) {
    %c0_i32 = arith.constant 0 : i32
    %c0_i32_0 = arith.constant 0 : i32
    return %arg0, %c0_i32 : i32, i32
  }
  func.func @transform_12(%arg0: i32) -> (i32, i32) {
    %c0_i32 = arith.constant 0 : i32
    %c0_i32_0 = arith.constant 0 : i32
    return %arg0, %c0_i32 : i32, i32
  }
}

</mosaic_0001>

<bundles_post_ra>
// kernel: tpu_custom_call.1
= control target key start
LH: loop header
LB: loop body
LE: loop exit
PB: predicated region body
PF: predicated region fallthrough
CT: control target
= control target key end

     0   :  { %18 = vsyncpa [#allocation3], 0  ;;  %s1886_s0 = inlined_call_operand.hbm [shape: bf16[8,256], index: 0, kind: input, shape index: {}]   ;;  %s1887_s1 = inlined_call_operand.hbm [shape: bf16[8,128], index: 1, kind: input, shape index: {}]   ;;  %s1888_s2 = inlined_call_operand.hbm [shape: f32[8,128], index: 2, kind: input, shape index: {}]   ;;  %s1889_s3 = inlined_call_operand.hbm [shape: bf16[256,128], index: 3, kind: input, shape index: {}]   ;;  %s1890_s4 = inlined_call_operand.hbm [shape: bf16[128,128], index: 4, kind: input, shape index: {}]   ;;  %s1891_s5 = inlined_call_operand.hbm [shape: bf16[128,256], index: 5, kind: input, shape index: {}]   ;;  %s1892_s6 = inlined_call_operand.hbm [shape: bf16[128,128], index: 6, kind: input, shape index: {}]   ;;  %s1893_s7 = inlined_call_operand.hbm [shape: bf16[128,128], index: 7, kind: input, shape index: {}]   ;;  %s1894_s8 = inlined_call_operand.hbm [shape: bf16[128,128], index: 8, kind: input, shape index: {}]   ;;  %s1895_s9 = inlined_call_operand.vmem [shape: f32[1,768], index: 9, kind: input, shape index: {}]   ;;  %s1896_s10 = inlined_call_operand.hbm [shape: f32[8,128], index: 10, kind: output, shape index: {0}]   ;;  %s1897_s11 = inlined_call_operand.hbm [shape: f32[8,256], index: 11, kind: output, shape index: {1}]   ;;  %s1898_s12 = inlined_call_operand.hbm [shape: f32[8,128], index: 12, kind: output, shape index: {2}]  }
   0x1   :  { %19 = vsyncpa [#allocation6], 0 }
   0x2   :  { %20 = vsyncpa [#allocation9], 0 }
   0x3   :  { %21 = vsyncpa [#allocation12], 0 }
   0x4   :  { %22 = vsyncpa [#allocation15], 0 }
   0x5   :  { %23 = vsyncpa [#allocation4], 0 }
   0x6   :  { %24 = vsyncpa [#allocation19], 0  ;;  %s1581_s21 = smov [#allocation5]   ;;  %s1582_s23 = smov [#allocation8]  }
   0x7   :  { %s41_s22 = sshll.u32 %s1581_s21, 4  ;;  %s60_s24 = sshll.u32 %s1582_s23, 4  ;;  %s42_s22 = int_to_ptr.vmem [resolvable:$true] %s41_s22  ;;  %s1665_s24 = int_to_ptr.vmem [resolvable:$true] %s60_s24 }
   0x8   :  { %s1303_s27 = scalar_lea.hbm %s1887_s1, 64 }
   0x9   :  { %p1304_p0 = scmp.ne.s32.totalorder %s1887_s1, %s1303_s27  ;;  %p1307_p1 = scmp.lt.u32.totalorder %s1303_s27, %s1887_s1 }
   0xb   :  { %p1309_p2 = pnand %p1307_p1, %p1304_p0 }
   0xd   :  { %1312 = shalt.err (!%p1309_p2)
}
   0xe   :  { %s1313_s14 = scalar_lea.vmem %s42_s22, 64  ;;  %p1318_p4 = scmp.lt.s32.totalorder %s42_s22, %s42_s22 }
   0xf   :  { %p1314_p3 = scmp.ne.s32.totalorder %s42_s22, %s1313_s14  ;;  %p1319_p5 = scmp.lt.s32.totalorder %s1313_s14, %s1313_s14 }
  0x11   :  { %p1320_p6 = por %p1319_p5, %p1318_p4 }
  0x13   :  { %p1321_p7 = pnand %p1320_p6, %p1314_p3 }
  0x15   :  { %1324 = shalt.err (!%p1321_p7)
}
  0x16   :  { %44 = dma.hbm_to_vmem [thread:$0]  %s1887_s1, 64, %s42_s22, [#allocation6]  }
  0x17   :  { %s1325_s19 = scalar_lea.hbm %s1889_s3, 2048 }
  0x18   :  { %p1326_p8 = scmp.ne.s32.totalorder %s1889_s3, %s1325_s19  ;;  %p1329_p9 = scmp.lt.u32.totalorder %s1325_s19, %s1889_s3 }
  0x1a   :  { %p1331_p10 = pnand %p1329_p9, %p1326_p8 }
  0x1c   :  { %1334 = shalt.err (!%p1331_p10)
}
  0x1d   :  { %s1335_s26 = scalar_lea.vmem %s1665_s24, 2048  ;;  %p1340_p12 = scmp.lt.s32.totalorder %s1665_s24, %s1665_s24 }
  0x1e   :  { %p1336_p11 = scmp.ne.s32.totalorder %s1665_s24, %s1335_s26  ;;  %p1341_p13 = scmp.lt.s32.totalorder %s1335_s26, %s1335_s26 }
  0x20   :  { %p1342_p0 = por %p1341_p13, %p1340_p12 }
  0x22   :  { %p1343_p1 = pnand %p1342_p0, %p1336_p11 }
  0x24   :  { %1346 = shalt.err (!%p1343_p1)
}
  0x25   :  { %s1583_s1 = smov 64   ;;  %s1584_s22 = smov 4  }
  0x26   :  { %66 = dma.hbm_to_vmem [thread:$0]  %s1889_s3, 2048, %s1665_s24, [#allocation9], %s1583_s1, %s1583_s1, %s1584_s22  }
  0x27   :  { %s1585_s29 = smov [#allocation11]   ;;  %s1347_s15 = scalar_lea.hbm %s1891_s5, 2048 }
  0x28   :  { %s84_s30 = sshll.u32 %s1585_s29, 4  ;;  %p1348_p2 = scmp.ne.s32.totalorder %s1891_s5, %s1347_s15  ;;  %s85_s30 = int_to_ptr.vmem [resolvable:$true] %s84_s30 }
  0x29   :  { %p1351_p3 = scmp.lt.u32.totalorder %s1347_s15, %s1891_s5 }
  0x2b   :  { %p1353_p4 = pnand %p1351_p3, %p1348_p2 }
  0x2d   :  { %1356 = shalt.err (!%p1353_p4)
}
  0x2e   :  { %s1357_s20 = scalar_lea.vmem %s85_s30, 2048  ;;  %p1362_p6 = scmp.lt.s32.totalorder %s85_s30, %s85_s30 }
  0x2f   :  { %p1358_p5 = scmp.ne.s32.totalorder %s85_s30, %s1357_s20  ;;  %p1363_p7 = scmp.lt.s32.totalorder %s1357_s20, %s1357_s20 }
  0x31   :  { %p1364_p8 = por %p1363_p7, %p1362_p6 }
  0x33   :  { %p1365_p9 = pnand %p1364_p8, %p1358_p5 }
  0x35   :  { %1368 = shalt.err (!%p1365_p9)
}
  0x36   :  { %s1586_s3 = smov 128   ;;  %s1587_s24 = smov 8  }
  0x37   :  { %90 = dma.hbm_to_vmem [thread:$0]  %s1891_s5, 2048, %s85_s30, [#allocation12], %s1586_s3, %s1586_s3, %s1587_s24  }
  0x38   :  { %s1588_s25 = smov [#allocation14]   ;;  %s1589_s27 = smov [#allocation2]  }
  0x39   :  { %s108_s26 = sshll.u32 %s1588_s25, 4  ;;  %s31_s28 = sshll.u32 %s1589_s27, 4  ;;  %s109_s26 = int_to_ptr.vmem [resolvable:$true] %s108_s26  ;;  %s32_s28 = int_to_ptr.vmem [resolvable:$true] %s31_s28 }
  0x3a   :  { %s1369_s14 = scalar_lea.hbm %s1893_s7, 1024 }
  0x3b   :  { %p1370_p10 = scmp.ne.s32.totalorder %s1893_s7, %s1369_s14  ;;  %p1373_p11 = scmp.lt.u32.totalorder %s1369_s14, %s1893_s7 }
  0x3d   :  { %p1375_p12 = pnand %p1373_p11, %p1370_p10 }
  0x3f   :  { %1378 = shalt.err (!%p1375_p12)
}
  0x40   :  { %s1379_s5 = scalar_lea.vmem %s109_s26, 1024  ;;  %p1384_p0 = scmp.lt.s32.totalorder %s109_s26, %s109_s26 }
  0x41   :  { %p1380_p13 = scmp.ne.s32.totalorder %s109_s26, %s1379_s5  ;;  %p1385_p1 = scmp.lt.s32.totalorder %s1379_s5, %s1379_s5 }
  0x43   :  { %p1386_p2 = por %p1385_p1, %p1384_p0 }
  0x45   :  { %p1387_p3 = pnand %p1386_p2, %p1380_p13 }
  0x47   :  { %1390 = shalt.err (!%p1387_p3)
}
  0x48   :  { %114 = dma.hbm_to_vmem [thread:$0]  %s1893_s7, 1024, %s109_s26, [#allocation15], %s1583_s1, %s1583_s1, %s1584_s22  }
  0x49   :  { %s1391_s24 = scalar_lea.hbm %s1886_s0, 128 }
  0x4a   :  { %p1392_p4 = scmp.ne.s32.totalorder %s1886_s0, %s1391_s24  ;;  %p1395_p5 = scmp.lt.u32.totalorder %s1391_s24, %s1886_s0 }
  0x4c   :  { %p1397_p6 = pnand %p1395_p5, %p1392_p4 }
  0x4e   :  { %1400 = shalt.err (!%p1397_p6)
}
  0x4f   :  { %s1401_s29 = scalar_lea.vmem %s32_s28, 128  ;;  %p1406_p8 = scmp.lt.s32.totalorder %s32_s28, %s32_s28 }
  0x50   :  { %p1402_p7 = scmp.ne.s32.totalorder %s32_s28, %s1401_s29  ;;  %p1407_p9 = scmp.lt.s32.totalorder %s1401_s29, %s1401_s29 }
  0x52   :  { %p1408_p10 = por %p1407_p9, %p1406_p8 }
  0x54   :  { %p1409_p11 = pnand %p1408_p10, %p1402_p7 }
  0x56   :  { %1412 = shalt.err (!%p1409_p11)
}
  0x57   :  { %34 = dma.hbm_to_vmem [thread:$0]  %s1886_s0, 128, %s32_s28, [#allocation3]  }
  0x58   :  { %s1590_s13 = smov [#allocation7]   ;;  %s1591_s15 = smov [#allocation10]  }
  0x59   :  { %s51_s14 = sshll.u32 %s1590_s13, 4  ;;  %s72_s16 = sshll.u32 %s1591_s15, 4  ;;  %s52_s14 = int_to_ptr.vmem [resolvable:$true] %s51_s14  ;;  %s73_s16 = int_to_ptr.vmem [resolvable:$true] %s72_s16 }
  0x5a   :  { %s1413_s5 = scalar_lea.hbm %s1888_s2, 128 }
  0x5b   :  { %p1414_p12 = scmp.ne.s32.totalorder %s1888_s2, %s1413_s5  ;;  %p1417_p13 = scmp.lt.u32.totalorder %s1413_s5, %s1888_s2 }
  0x5d   :  { %p1419_p0 = pnand %p1417_p13, %p1414_p12 }
  0x5f   :  { %1422 = shalt.err (!%p1419_p0)
}
  0x60   :  { %s1423_s0 = scalar_lea.vmem %s52_s14, 128  ;;  %p1428_p2 = scmp.lt.s32.totalorder %s52_s14, %s52_s14 }
  0x61   :  { %p1424_p1 = scmp.ne.s32.totalorder %s52_s14, %s1423_s0  ;;  %p1429_p3 = scmp.lt.s32.totalorder %s1423_s0, %s1423_s0 }
  0x63   :  { %p1430_p4 = por %p1429_p3, %p1428_p2 }
  0x65   :  { %p1431_p5 = pnand %p1430_p4, %p1424_p1 }
  0x67   :  { %1434 = shalt.err (!%p1431_p5)
}
  0x68   :  { %54 = dma.hbm_to_vmem [thread:$0]  %s1888_s2, 128, %s52_s14, [#allocation6]  }
  0x69   :  { %s1435_s25 = scalar_lea.hbm %s1890_s4, 1024 }
  0x6a   :  { %p1436_p6 = scmp.ne.s32.totalorder %s1890_s4, %s1435_s25  ;;  %p1439_p7 = scmp.lt.u32.totalorder %s1435_s25, %s1890_s4 }
  0x6c   :  { %p1441_p8 = pnand %p1439_p7, %p1436_p6 }
  0x6e   :  { %1444 = shalt.err (!%p1441_p8)
}
  0x6f   :  { %s1445_s13 = scalar_lea.vmem %s73_s16, 1024  ;;  %p1450_p10 = scmp.lt.s32.totalorder %s73_s16, %s73_s16 }
  0x70   :  { %p1446_p9 = scmp.ne.s32.totalorder %s73_s16, %s1445_s13  ;;  %p1451_p11 = scmp.lt.s32.totalorder %s1445_s13, %s1445_s13 }
  0x72   :  { %p1452_p12 = por %p1451_p11, %p1450_p10 }
  0x74   :  { %p1453_p13 = pnand %p1452_p12, %p1446_p9 }
  0x76   :  { %1456 = shalt.err (!%p1453_p13)
}
  0x77   :  { %78 = dma.hbm_to_vmem [thread:$0]  %s1890_s4, 1024, %s73_s16, [#allocation9], %s1583_s1, %s1583_s1, %s1584_s22  }
  0x78   :  { %s1592_s15 = smov [#allocation13]   ;;  %s1593_s18 = smov [#allocation16]  }
  0x79   :  { %s96_s17 = sshll.u32 %s1592_s15, 4  ;;  %s120_s5 = sshll.u32 %s1593_s18, 4  ;;  %s97_s17 = int_to_ptr.vmem [resolvable:$true] %s96_s17  ;;  %s121_s5 = int_to_ptr.vmem [resolvable:$true] %s120_s5 }
  0x7a   :  { %s1457_s20 = scalar_lea.hbm %s1892_s6, 1024 }
  0x7b   :  { %p1458_p0 = scmp.ne.s32.totalorder %s1892_s6, %s1457_s20  ;;  %p1461_p1 = scmp.lt.u32.totalorder %s1457_s20, %s1892_s6 }
  0x7d   :  { %p1463_p2 = pnand %p1461_p1, %p1458_p0 }
  0x7f   :  { %1466 = shalt.err (!%p1463_p2)
}
  0x80   :  { %s1467_s4 = scalar_lea.vmem %s97_s17, 1024  ;;  %p1472_p4 = scmp.lt.s32.totalorder %s97_s17, %s97_s17 }
  0x81   :  { %p1468_p3 = scmp.ne.s32.totalorder %s97_s17, %s1467_s4  ;;  %p1473_p5 = scmp.lt.s32.totalorder %s1467_s4, %s1467_s4 }
  0x83   :  { %p1474_p6 = por %p1473_p5, %p1472_p4 }
  0x85   :  { %p1475_p7 = pnand %p1474_p6, %p1468_p3 }
  0x87   :  { %1478 = shalt.err (!%p1475_p7)
}
  0x88   :  { %102 = dma.hbm_to_vmem [thread:$0]  %s1892_s6, 1024, %s97_s17, [#allocation12], %s1583_s1, %s1583_s1, %s1584_s22  }
  0x89   :  { %s1479_s27 = scalar_lea.hbm %s1894_s8, 1024 }
  0x8a   :  { %p1480_p8 = scmp.ne.s32.totalorder %s1894_s8, %s1479_s27  ;;  %p1483_p9 = scmp.lt.u32.totalorder %s1479_s27, %s1894_s8 }
  0x8c   :  { %p1485_p10 = pnand %p1483_p9, %p1480_p8 }
  0x8e   :  { %1488 = shalt.err (!%p1485_p10)
}
  0x8f   :  { %s1489_s2 = scalar_lea.vmem %s121_s5, 1024  ;;  %p1494_p12 = scmp.lt.s32.totalorder %s121_s5, %s121_s5 }
  0x90   :  { %p1490_p11 = scmp.ne.s32.totalorder %s121_s5, %s1489_s2  ;;  %p1495_p13 = scmp.lt.s32.totalorder %s1489_s2, %s1489_s2 }
  0x92   :  { %p1496_p0 = por %p1495_p13, %p1494_p12 }
  0x94   :  { %p1497_p1 = pnand %p1496_p0, %p1490_p11 }
  0x96   :  { %1500 = shalt.err (!%p1497_p1)
}
  0x97   :  { %126 = dma.hbm_to_vmem [thread:$0]  %s1894_s8, 1024, %s121_s5, [#allocation15], %s1583_s1, %s1583_s1, %s1584_s22  }
  0x98   :  { %1567 = dma.done.wait [#allocation3], 128  }
  0x99   :  { %1568 = vsyncadd [#allocation3], 4294967168 }
  0x9a   :  { %1569 = dma.done.wait [#allocation6], 192  }
  0x9b   :  { %1570 = vsyncadd [#allocation6], 4294967104 }
  0x9c   :  { %1571 = dma.done.wait [#allocation9], 3072  }
  0x9d   :  { %1572 = vsyncadd [#allocation9], 4294964224 }
  0x9e   :  { %1573 = dma.done.wait [#allocation12], 3072  }
  0x9f   :  { %1574 = vsyncadd [#allocation12], 4294964224 }
  0xa0   :  { %1575 = dma.done.wait [#allocation15], 2048  }
  0xa1   :  { %1576 = vsyncadd [#allocation15], 4294965248  ;;  %v1594_v0 = vmov 0.0   ;;  %v1223_v1 = vld [vmem:[#allocation8 + $0x40] sm:$0xff]   ;;  %v1225_v3 = vld [vmem:[#allocation8 + $0x48] sm:$0xff]   ;;  %vm1595_vm0 = vmmov 0  }
  0xa2   :  { %1124 = vmatprep.subr.bf16.mxu1 %v1594_v0  ;;  %v1224_v2 = vld [vmem:[#allocation8] sm:$0xff]   ;;  %1066 = vmatprep.subr.bf16.mxu0 %v1223_v1  ;;  %v1226_v4 = vld [vmem:[#allocation8 + $0x8] sm:$0xff]   ;;  %v1227_v5 = vld [vmem:[#allocation8 + $0x50] sm:$0xff]   ;;  %v1596_v53 = vmov 0   ;;  %s1597_s19 = smov [#allocation18]  }
  0xa3   :  { %1067 = vmatpush3.bf16.msra.mxu0 %v1224_v2  ;;  %v1228_v6 = vld [vmem:[#allocation8 + $0x10] sm:$0xff]   ;;  %v1229_v7 = vld [vmem:[#allocation8 + $0x58] sm:$0xff]   ;;  %v1231_v9 = vld [vmem:[#allocation8 + $0x60] sm:$0xff]   ;;  %1140 = vmatprep.mubr.msk.bf16.mxu1 %vm1595_vm0, %v1594_v0  ;;  %s966_s20 = sshll.u32 %s1597_s19, 4  ;;  %s967_s20 = int_to_ptr.vmem [resolvable:$true] %s966_s20 }
  0xa4   :  { %1068 = vmatprep.subr.bf16.mxu0 %v1225_v3  ;;  %v1230_v8 = vld [vmem:[#allocation8 + $0x18] sm:$0xff]   ;;  %v1232_v10 = vld [vmem:[#allocation8 + $0x20] sm:$0xff]   ;;  %v1233_v11 = vld [vmem:[#allocation8 + $0x68] sm:$0xff]   ;;  %s1501_s3 = scalar_lea.vmem %s967_s20, 256  ;;  %p1506_p3 = scmp.lt.s32.totalorder %s967_s20, %s967_s20 }
  0xa5   :  { %v157_v12 = vld [vmem:[#allocation2] sm:$0xff]  ;;  %v1241_v14 = vld [vmem:[#allocation10] sm:$0xff]   ;;  %v1237_v19 = vld [vmem:[#allocation8 + $0x78] sm:$0xff]   ;;  %p1502_p2 = scmp.ne.s32.totalorder %s967_s20, %s1501_s3  ;;  %p1507_p4 = scmp.lt.s32.totalorder %s1501_s3, %s1501_s3 }
  0xa6   :  { %v998_v13 = vcombine.high %v157_v12, %v157_v12  ;;  %v1234_v15 = vld [vmem:[#allocation8 + $0x28] sm:$0xff]   ;;  %v1235_v16 = vld [vmem:[#allocation8 + $0x70] sm:$0xff]   ;;  %1125 = vmatpush3.bf16.msra.mxu1 %v1241_v14  ;;  %v1238_v21 = vld [vmem:[#allocation8 + $0x38] sm:$0xff]   ;;  %v997_v23 = vcombine.low %v157_v12, %v157_v12 }
  0xa7   :  { %1069 = vmatpush3.bf16.msra.mxu0 %v1226_v4  ;;  %v1242_v17 = vld [vmem:[#allocation10 + $0x8] sm:$0xff]   ;;  %v1236_v18 = vld [vmem:[#allocation8 + $0x30] sm:$0xff]   ;;  %1126 = vmatprep.subr.bf16.mxu1 %v1594_v0  ;;  %v1244_v22 = vld [vmem:[#allocation10 + $0x18] sm:$0xff]   ;;  %p1508_p5 = por %p1507_p4, %p1506_p3 }
  0xa8   :  { %1070 = vmatprep.subr.bf16.mxu0 %v1227_v5  ;;  %332 = vmatprep.mubr.bf16.mxu0 %v998_v13  ;;  %v1243_v20 = vld [vmem:[#allocation10 + $0x10] sm:$0xff]   ;;  %v1245_v24 = vld [vmem:[#allocation10 + $0x20] sm:$0xff]   ;;  %v1246_v25 = vld [vmem:[#allocation10 + $0x28] sm:$0xff]  }
  0xa9   :  { %v1247_v26 = vld [vmem:[#allocation10 + $0x30] sm:$0xff]   ;;  %v1248_v27 = vld [vmem:[#allocation10 + $0x38] sm:$0xff]   ;;  %v1249_v28 = vld [vmem:[#allocation11] ss:$8 sps:$4 sm:$0xff]   ;;  %p1509_p6 = pnand %p1508_p5, %p1502_p2 }
  0xaa   :  { %1127 = vmatpush3.bf16.msra.mxu1 %v1242_v17  ;;  %v1251_v29 = vld [vmem:[#allocation11 + $0x4] ss:$8 sps:$4 sm:$0xff]   ;;  %v1254_v30 = vld [vmem:[#allocation11 + $0x14] ss:$8 sps:$4 sm:$0xff]   ;;  %v1252_v31 = vld [vmem:[#allocation11 + $0x10] ss:$8 sps:$4 sm:$0xff]  }
  0xab   :  { %1071 = vmatpush3.bf16.msra.mxu0 %v1228_v6  ;;  %1128 = vmatprep.subr.bf16.mxu1 %v1594_v0  ;;  %v1257_v32 = vld [vmem:[#allocation11 + $0x24] ss:$8 sps:$4 sm:$0xff]   ;;  %v1255_v33 = vld [vmem:[#allocation11 + $0x20] ss:$8 sps:$4 sm:$0xff]   ;;  %v1260_v34 = vld [vmem:[#allocation11 + $0x34] ss:$8 sps:$4 sm:$0xff]  }
  0xac   :  { %1072 = vmatprep.subr.bf16.mxu0 %v1229_v7  ;;  %v1258_v35 = vld [vmem:[#allocation11 + $0x30] ss:$8 sps:$4 sm:$0xff]   ;;  %v1263_v36 = vld [vmem:[#allocation11 + $0x44] ss:$8 sps:$4 sm:$0xff]   ;;  %v1261_v37 = vld [vmem:[#allocation11 + $0x40] ss:$8 sps:$4 sm:$0xff]  }
  0xad   :  { %v1266_v38 = vld [vmem:[#allocation11 + $0x54] ss:$8 sps:$4 sm:$0xff]   ;;  %v1264_v39 = vld [vmem:[#allocation11 + $0x50] ss:$8 sps:$4 sm:$0xff]   ;;  %v1269_v40 = vld [vmem:[#allocation11 + $0x64] ss:$8 sps:$4 sm:$0xff]  }
  0xae   :  { %1129 = vmatpush3.bf16.msra.mxu1 %v1243_v20  ;;  %v1267_v41 = vld [vmem:[#allocation11 + $0x60] ss:$8 sps:$4 sm:$0xff]   ;;  %v996_v43 = vld [vmem:[%s1895_s9] ss:$0 sm:$0xff]  ;;  %v1272_v51 = vld [vmem:[#allocation11 + $0x74] ss:$8 sps:$4 sm:$0xff]  }
  0xaf   :  { %1073 = vmatpush3.bf16.msra.mxu0 %v1230_v8  ;;  %1130 = vmatprep.subr.bf16.mxu1 %v1594_v0  ;;  %v1270_v52 = vld [vmem:[#allocation11 + $0x70] ss:$8 sps:$4 sm:$0xff]   ;;  %v1273_v54 = vld [vmem:[#allocation14] sm:$0xff]   ;;  %v1275_v55 = vld [vmem:[#allocation14 + $0x8] sm:$0xff]  }
  0xb0   :  { %1074 = vmatprep.subr.bf16.mxu0 %v1231_v9  ;;  %v1277_v56 = vld [vmem:[#allocation14 + $0x10] sm:$0xff]   ;;  %v1015_v57 = vld [vmem:[%s1895_s9 + $0x1] ss:$0 sm:$0xff]  ;;  %v1274_v1 = vld [vmem:[#allocation13] sm:$0xff]  }
  0xb1   :  { %v1276_v3 = vld [vmem:[#allocation13 + $0x8] sm:$0xff]   ;;  %v1278_v4 = vld [vmem:[#allocation13 + $0x10] sm:$0xff]   ;;  %v1279_v5 = vld [vmem:[#allocation14 + $0x18] sm:$0xff]  }
  0xb2   :  { %1131 = vmatpush3.bf16.msra.mxu1 %v1244_v22  ;;  %v1280_v6 = vld [vmem:[#allocation13 + $0x18] sm:$0xff]   ;;  %v1281_v7 = vld [vmem:[#allocation14 + $0x20] sm:$0xff]   ;;  %v1283_v9 = vld [vmem:[#allocation14 + $0x28] sm:$0xff]   ;;  %v473_v22 = vlaneseq }
  0xb3   :  { %1075 = vmatpush3.bf16.msra.mxu0 %v1232_v10  ;;  %1132 = vmatprep.subr.bf16.mxu1 %v1594_v0  ;;  %v1282_v8 = vld [vmem:[#allocation13 + $0x20] sm:$0xff]   ;;  %v1284_v10 = vld [vmem:[#allocation13 + $0x28] sm:$0xff]   ;;  %v1286_v12 = vld [vmem:[#allocation13 + $0x30] sm:$0xff]  }
  0xb4   :  { %1076 = vmatprep.subr.bf16.mxu0 %v1233_v11  ;;  %v1285_v11 = vld [vmem:[#allocation14 + $0x30] sm:$0xff]   ;;  %v1287_v13 = vld [vmem:[#allocation14 + $0x38] sm:$0xff]   ;;  %v1290_v17 = vld [vmem:[#allocation16 + $0x8] sm:$0xff]  }
  0xb5   :  { %v1288_v14 = vld [vmem:[#allocation13 + $0x38] sm:$0xff]   ;;  %v1293_v20 = vld [vmem:[#allocation16 + $0x20] sm:$0xff]  }
  0xb6   :  { %1133 = vmatpush3.bf16.msra.mxu1 %v1245_v24 }
  0xb7   :  { %1077 = vmatpush3.bf16.msra.mxu0 %v1234_v15  ;;  %1134 = vmatprep.subr.bf16.mxu1 %v1594_v0  ;;  %v630_v15 = vld [vmem:[#allocation5] sm:$0xf] }
  0xb8   :  { %1078 = vmatprep.subr.bf16.mxu0 %v1235_v16  ;;  %v1289_v16 = vld [vmem:[#allocation16] sm:$0xff]  }
  0xba   :  { %1135 = vmatpush3.bf16.msra.mxu1 %v1246_v25  ;;  %v471_v25 = vld [vmem:[%s1895_s9 + $0x2] sm:$0x3] }
  0xbb   :  { %1079 = vmatpush3.bf16.msra.mxu0 %v1236_v18  ;;  %1136 = vmatprep.subr.bf16.mxu1 %v1594_v0  ;;  %v1291_v18 = vld [vmem:[#allocation16 + $0x10] sm:$0xff]  }
  0xbc   :  { %1080 = vmatprep.subr.bf16.mxu0 %v1237_v19  ;;  %v1292_v19 = vld [vmem:[#allocation16 + $0x18] sm:$0xff]  }
  0xbe   :  { %1137 = vmatpush3.bf16.msra.mxu1 %v1247_v26 }
  0xbf   :  { %1081 = vmatpush3.bf16.msra.mxu0 %v1238_v21  ;;  %1138 = vmatprep.subr.bf16.mxu1 %v1594_v0  ;;  %v1294_v21 = vld [vmem:[#allocation16 + $0x28] sm:$0xff]  }
  0xc0   :  { %563 = vmatprep.subr.bf16.mxu0 %v1251_v29 }
  0xc2   :  { %333 = vmatmul.mubr.bf16.vlgmr.msra.gmra.mrb[0].mxu0 %v997_v23  ;;  %1139 = vmatpush3.bf16.msra.mxu1 %v1248_v27  ;;  %v474_v23 = vshrl.u32 %v473_v22, 7 }
  0xc3   :  { %1144 = vmatprep.subr.bf16.mxu1 %v1594_v0  ;;  %564 = vmatpush1.bf16.msra.mxu0 %v1249_v28 }
  0xc4   :  { %565 = vmatprep.subr.bf16.mxu0 %v1254_v30  ;;  %595 = vmatprep.mubr.bf16.mxu0 %v1596_v53  ;;  %v475_v24 = vsub.s32 0, %v474_v23  ;;  %v479_v26 = vsub.s32 1, %v474_v23 }
  0xc6   :  { %v476_v27 = vrot.slane %v471_v25, %v475_v24  ;;  %v480_v28 = vrot.slane %v471_v25, %v479_v26 }
  0xc7   :  { %566 = vmatpush1.bf16.msra.mxu0 %v1252_v31 }
  0xc8   :  { %567 = vmatprep.subr.bf16.mxu0 %v1257_v32 }
  0xcb   :  { %568 = vmatpush1.bf16.msra.mxu0 %v1255_v33 }
  0xcc   :  { %569 = vmatprep.subr.bf16.mxu0 %v1260_v34 }
  0xcf   :  { %570 = vmatpush1.bf16.msra.mxu0 %v1258_v35 }
  0xd0   :  { %571 = vmatprep.subr.bf16.mxu0 %v1263_v36 }
  0xd3   :  { %572 = vmatpush1.bf16.msra.mxu0 %v1261_v37  ;;  %v606_v37 = vld [vmem:[#allocation7] sm:$0xff] }
  0xd4   :  { %573 = vmatprep.subr.bf16.mxu0 %v1266_v38 }
  0xd7   :  { %574 = vmatpush1.bf16.msra.mxu0 %v1264_v39 }
  0xd8   :  { %575 = vmatprep.subr.bf16.mxu0 %v1269_v40 }
  0xdb   :  { %576 = vmatpush1.bf16.msra.mxu0 %v1267_v41 }
  0xdc   :  { %577 = vmatprep.subr.bf16.mxu0 %v1272_v51 }
  0xdf   :  { %578 = vmatpush1.bf16.msra.mxu0 %v1270_v52 }
  0xe0   :  { %1164 = vmatprep.subr.bf16.mxu0 %v1594_v0 }
 0x195   :  { %v1082_v42 = vpop.f32.mrb[0].mxu0 }
 0x196   :  { %v1083_v44 = vpop.f32.mrb[1].mxu0 }
 0x197   :  { %v1084_v45 = vadd.f32 %v1083_v44, %v1082_v42  ;;  %v1085_v46 = vpop.f32.mrb[2].mxu0 }
 0x198   :  { %v1086_v47 = vpop.f32.mrb[3].mxu0  ;;  %v1295_v46 = vld [vmem:[#allocation16 + $0x30] sm:$0xff]  }
 0x199   :  { %v335_v48 = vadd.f32 %v1084_v45, %v996_v43  ;;  %v1296_v47 = vld [vmem:[#allocation16 + $0x38] sm:$0xff]  }
 0x19b   :  { %v340_v49 = vmax.f32 %v335_v48, 0.0 }
 0x19d   :  { %v341_v50 = vpack.c.bf16 %v340_v49, %v340_v49  ;;  %v1056_v49 = vld [vmem:[%s1895_s9 + $0x4] ss:$0 sm:$0xff] }
 0x19f   :  { %1141 = vmatmul.mubr.bf16.vlgmr.msra.gmra.mrb[0].mxu1 %v341_v50 }
 0x1a0   :  { %1160 = vmatprep.mubr.msk.bf16.mxu1 %vm1595_vm0, %v1594_v0  ;;  %1145 = vmatpush3.bf16.msra.mxu1 %v1273_v54 }
 0x1a1   :  { %1146 = vmatprep.subr.bf16.mxu1 %v1594_v0 }
 0x1a4   :  { %1147 = vmatpush3.bf16.msra.mxu1 %v1275_v55 }
 0x1a5   :  { %1148 = vmatprep.subr.bf16.mxu1 %v1594_v0 }
 0x1a8   :  { %1149 = vmatpush3.bf16.msra.mxu1 %v1277_v56 }
 0x1a9   :  { %1150 = vmatprep.subr.bf16.mxu1 %v1594_v0 }
 0x1ac   :  { %1151 = vmatpush3.bf16.msra.mxu1 %v1279_v5 }
 0x1ad   :  { %1152 = vmatprep.subr.bf16.mxu1 %v1594_v0 }
 0x1b0   :  { %1153 = vmatpush3.bf16.msra.mxu1 %v1281_v7 }
 0x1b1   :  { %1154 = vmatprep.subr.bf16.mxu1 %v1594_v0 }
 0x1b4   :  { %1155 = vmatpush3.bf16.msra.mxu1 %v1283_v9 }
 0x1b5   :  { %1156 = vmatprep.subr.bf16.mxu1 %v1594_v0 }
 0x1b8   :  { %1157 = vmatpush3.bf16.msra.mxu1 %v1285_v11 }
 0x1b9   :  { %1158 = vmatprep.subr.bf16.mxu1 %v1594_v0 }
 0x1bc   :  { %1159 = vmatpush3.bf16.msra.mxu1 %v1287_v13 }
 0x1bd   :  { %1184 = vmatprep.subr.bf16.mxu1 %v1594_v0 }
 0x1bf   :  { %1161 = vmatmul.mubr.bf16.vlgmr.msra.gmra.mrb[4].mxu1 %v630_v15 }
 0x1c0   :  { %1200 = vmatprep.mubr.msk.bf16.mxu1 %vm1595_vm0, %v1594_v0  ;;  %1185 = vmatpush3.bf16.msra.mxu1 %v1289_v16 }
 0x1c1   :  { %1186 = vmatprep.subr.bf16.mxu1 %v1594_v0 }
 0x1c4   :  { %1187 = vmatpush3.bf16.msra.mxu1 %v1290_v17 }
 0x1c5   :  { %1188 = vmatprep.subr.bf16.mxu1 %v1594_v0 }
 0x1c8   :  { %1189 = vmatpush3.bf16.msra.mxu1 %v1291_v18 }
 0x1c9   :  { %1190 = vmatprep.subr.bf16.mxu1 %v1594_v0 }
 0x1cc   :  { %1191 = vmatpush3.bf16.msra.mxu1 %v1292_v19 }
 0x1cd   :  { %1192 = vmatprep.subr.bf16.mxu1 %v1594_v0 }
 0x1d0   :  { %1193 = vmatpush3.bf16.msra.mxu1 %v1293_v20 }
 0x1d1   :  { %1194 = vmatprep.subr.bf16.mxu1 %v1594_v0 }
 0x1d4   :  { %1195 = vmatpush3.bf16.msra.mxu1 %v1294_v21 }
 0x1d5   :  { %1196 = vmatprep.subr.bf16.mxu1 %v1594_v0 }
 0x1d8   :  { %1197 = vmatpush3.bf16.msra.mxu1 %v1295_v46 }
 0x1d9   :  { %1198 = vmatprep.subr.bf16.mxu1 %v1594_v0 }
 0x1dc   :  { %1199 = vmatpush3.bf16.msra.mxu1 %v1296_v47 }
 0x272   :  { %v447_v58 = vpop.f32.mrb[0].mxu1 }
 0x273   :  { %v448_v59 = vadd.f32 %v1015_v57, %v447_v58  ;;  %v1142_v60 = vpop.f32.mrb[1].mxu1 }
 0x274   :  { %v450_v61 = vpop.f32.mrb[2].mxu1 }
 0x275   :  { %v453_v62 = vmax.f32 %v448_v59, 0.0  ;;  %v1143_v63 = vpop.f32.mrb[3].mxu1 }
 0x277   :  { %v454_v2 = vpack.c.bf16 %v453_v62, %v453_v62 }
 0x279   :  { %596 = vmatmul.mubr.bf16.vlgmr.msra.gmra.mrb[4].mxu0 %v454_v2 }
 0x27a   :  { %1165 = vmatpush3.bf16.msra.mxu0 %v1274_v1  ;;  %1180 = vmatprep.mubr.msk.bf16.mxu0 %vm1595_vm0, %v1594_v0 }
 0x27b   :  { %1166 = vmatprep.subr.bf16.mxu0 %v1594_v0 }
 0x27e   :  { %1167 = vmatpush3.bf16.msra.mxu0 %v1276_v3 }
 0x27f   :  { %1168 = vmatprep.subr.bf16.mxu0 %v1594_v0 }
 0x282   :  { %1169 = vmatpush3.bf16.msra.mxu0 %v1278_v4 }
 0x283   :  { %1170 = vmatprep.subr.bf16.mxu0 %v1594_v0 }
 0x286   :  { %1171 = vmatpush3.bf16.msra.mxu0 %v1280_v6 }
 0x287   :  { %1172 = vmatprep.subr.bf16.mxu0 %v1594_v0 }
 0x28a   :  { %1173 = vmatpush3.bf16.msra.mxu0 %v1282_v8 }
 0x28b   :  { %1174 = vmatprep.subr.bf16.mxu0 %v1594_v0 }
 0x28e   :  { %1175 = vmatpush3.bf16.msra.mxu0 %v1284_v10 }
 0x28f   :  { %1176 = vmatprep.subr.bf16.mxu0 %v1594_v0 }
 0x292   :  { %1177 = vmatpush3.bf16.msra.mxu0 %v1286_v12  ;;  %v729_v42 = vpop.f32.mrb[4].mxu1 }
 0x293   :  { %1178 = vmatprep.subr.bf16.mxu0 %v1594_v0  ;;  %v1162_v43 = vpop.f32.mrb[5].mxu1 }
 0x294   :  { %v732_v44 = vpop.f32.mrb[6].mxu1 }
 0x295   :  { %v1163_v45 = vpop.f32.mrb[7].mxu1 }
 0x296   :  { %1179 = vmatpush3.bf16.msra.mxu0 %v1288_v14 }
 0x34c   :  { %v597_v29 = vpop.f32.mrb[4].mxu0 }
 0x34d   :  { %v598_v30 = vadd.f32 %v597_v29, %v476_v27  ;;  %v599_v31 = vpop.f32.mrb[5].mxu0 }
 0x34e   :  { %v600_v32 = vadd.f32 %v599_v31, %v480_v28  ;;  %v601_v33 = vpop.f32.mrb[6].mxu0 }
 0x34f   :  { %604 = vst [vmem:[#allocation18] sm:$0xff] %v598_v30  ;;  %v602_v34 = vpop.f32.mrb[7].mxu0 }
 0x350   :  { %605 = vst [vmem:[#allocation18 + $0x8] sm:$0xff] %v600_v32  ;;  %v607_v35 = vmul.f32 0.5, %v600_v32 }
 0x352   :  { %v608_v36 = vmul.f32 1.442695, %v607_v35 }
 0x354   :  { %1297 = vpow2.f32 %v608_v36 }
 0x35e   :  { %v1298_v38 = vpop.eup %1297 }
 0x35f   :  { %v610_v39 = vmul.f32 %v1298_v38, %v606_v37 }
 0x361   :  { %v611_v40 = vadd.f32 %v610_v39, %v598_v30 }
 0x363   :  { %v613_v41 = vpack.c.bf16 %v611_v40, %v611_v40  ;;  %612 = vst [vmem:[#allocation20] sm:$0xff] %v611_v40 }
 0x365   :  { %1181 = vmatmul.mubr.bf16.vlgmr.msra.gmra.mrb[8].mxu0 %v613_v41 }
 0x438   :  { %v817_v48 = vpop.f32.mrb[8].mxu0 }
 0x439   :  { %v818_v50 = vadd.f32 %v817_v48, %v729_v42  ;;  %v1182_v51 = vpop.f32.mrb[9].mxu0 }
 0x43a   :  { %v820_v52 = vpop.f32.mrb[10].mxu0 }
 0x43b   :  { %v830_v53 = vadd.f32 %v1056_v49, %v818_v50  ;;  %v1183_v54 = vpop.f32.mrb[11].mxu0 }
 0x43d   :  { %v831_v55 = vmax.f32 %v830_v53, 0.0 }
 0x43f   :  { %v832_v56 = vpack.c.bf16 %v831_v55, %v831_v55 }
 0x441   :  { %1201 = vmatmul.mubr.bf16.vlgmr.msra.gmra.mrb[8].mxu1 %v832_v56 }
 0x442   :  { %1512 = shalt.err (!%p1509_p6)
}
 0x443   :  { %s1513_s24 = scalar_lea.hbm %s1897_s11, 256 }
 0x444   :  { %p1514_p7 = scmp.ne.s32.totalorder %s1897_s11, %s1513_s24  ;;  %p1517_p8 = scmp.lt.u32.totalorder %s1513_s24, %s1897_s11 }
 0x446   :  { %p1519_p9 = pnand %p1517_p8, %p1514_p7 }
 0x448   :  { %1522 = shalt.err (!%p1519_p9)
}
 0x449   :  { %969 = dma.vmem_to_hbm [thread:$0]  %s967_s20, 256, %s1897_s11, [#allocation19]  }
 0x44a   :  { %s1598_s29 = smov [#allocation20]  }
 0x44b   :  { %s976_s7 = sshll.u32 %s1598_s29, 4  ;;  %s977_s7 = int_to_ptr.vmem [resolvable:$true] %s976_s7 }
 0x44c   :  { %s1523_s26 = scalar_lea.vmem %s977_s7, 128  ;;  %p1528_p11 = scmp.lt.s32.totalorder %s977_s7, %s977_s7 }
 0x44d   :  { %p1524_p10 = scmp.ne.s32.totalorder %s977_s7, %s1523_s26  ;;  %p1529_p12 = scmp.lt.s32.totalorder %s1523_s26, %s1523_s26 }
 0x44f   :  { %p1530_p13 = por %p1529_p12, %p1528_p11 }
 0x451   :  { %p1531_p0 = pnand %p1530_p13, %p1524_p10 }
 0x453   :  { %1534 = shalt.err (!%p1531_p0)
}
 0x454   :  { %s1535_s6 = scalar_lea.hbm %s1898_s12, 128 }
 0x455   :  { %p1536_p1 = scmp.ne.s32.totalorder %s1898_s12, %s1535_s6  ;;  %p1539_p2 = scmp.lt.u32.totalorder %s1535_s6, %s1898_s12 }
 0x457   :  { %p1541_p3 = pnand %p1539_p2, %p1536_p1 }
 0x459   :  { %1544 = shalt.err (!%p1541_p3)
}
 0x45a   :  { %979 = dma.vmem_to_hbm [thread:$0]  %s977_s7, 128, %s1898_s12, [#allocation19]   ;;  %v1057_v0 = vld [vmem:[%s1895_s9 + $0x5] ss:$0 sm:$0xff] }
 0x45b   :  { %s1599_s5 = smov [#allocation17]  }
 0x45c   :  { %s956_s30 = sshll.u32 %s1599_s5, 4  ;;  %s957_s30 = int_to_ptr.vmem [resolvable:$true] %s956_s30 }
 0x45d   :  { %s1545_s12 = scalar_lea.vmem %s957_s30, 128  ;;  %p1550_p5 = scmp.lt.s32.totalorder %s957_s30, %s957_s30 }
 0x45e   :  { %p1546_p4 = scmp.ne.s32.totalorder %s957_s30, %s1545_s12  ;;  %p1551_p6 = scmp.lt.s32.totalorder %s1545_s12, %s1545_s12 }
 0x460   :  { %p1552_p7 = por %p1551_p6, %p1550_p5 }
 0x462   :  { %p1553_p8 = pnand %p1552_p7, %p1546_p4 }
 0x514   :  { %v938_v57 = vpop.f32.mrb[8].mxu1 }
 0x515   :  { %v939_v58 = vadd.f32 %v1057_v0, %v938_v57  ;;  %v1202_v59 = vpop.f32.mrb[9].mxu1 }
 0x516   :  { %v941_v60 = vpop.f32.mrb[10].mxu1 }
 0x517   :  { %v944_v61 = vsub.f32 0.0, %v939_v58  ;;  %v1203_v62 = vpop.f32.mrb[11].mxu1 }
 0x519   :  { %v945_v63 = vmul.f32 1.442695, %v944_v61 }
 0x51b   :  { %1299 = vpow2.f32 %v945_v63 }
 0x525   :  { %v1300_v1 = vpop.eup %1299 }
 0x526   :  { %v947_v2 = vadd.f32 1.0, %v1300_v1 }
 0x528   :  { %1301 = vrcp.f32 %v947_v2 }
 0x532   :  { %v1302_v3 = vpop.eup %1301 }
 0x533   :  { %949 = vst [vmem:[#allocation17] sm:$0xff] %v1302_v3 }
 0x534   :  { %1556 = shalt.err (!%p1553_p8)
}
 0x535   :  { %s1557_s20 = scalar_lea.hbm %s1896_s10, 128 }
 0x536   :  { %p1558_p9 = scmp.ne.s32.totalorder %s1896_s10, %s1557_s20  ;;  %p1561_p10 = scmp.lt.u32.totalorder %s1557_s20, %s1896_s10 }
 0x538   :  { %p1563_p11 = pnand %p1561_p10, %p1558_p9 }
 0x53a   :  { %1566 = shalt.err (!%p1563_p11)
}
 0x53b   :  { %959 = dma.vmem_to_hbm [thread:$0]  %s957_s30, 128, %s1896_s10, [#allocation4]  }
 0x53c   :  { %1577 = dma.done.wait [#allocation4], 128  }
 0x53d   :  { %1578 = vsyncadd [#allocation4], 4294967168 }
 0x53e   :  { %1579 = dma.done.wait [#allocation19], 384  }
 0x53f   :  { %1580 = vsyncadd [#allocation19], 4294966912 }
 0x540   :  { %989 = vsyncpa [#allocation3], 1 }
 0x541   :  { %990 = vsyncpa [#allocation6], 1 }
 0x542   :  { %991 = vsyncpa [#allocation9], 1 }
 0x543   :  { %992 = vsyncpa [#allocation12], 1 }
 0x544   :  { %993 = vsyncpa [#allocation15], 1 }
 0x545   :  { %994 = vsyncpa [#allocation4], 1 }
 0x546   :  { %995 = vsyncpa [#allocation19], 1 }

// kernel: tpu_custom_call.1
= control target key start
LH: loop header
LB: loop body
LE: loop exit
PB: predicated region body
PF: predicated region fallthrough
CT: control target
= control target key end

     0   :  { %18 = vsyncpa [#allocation3], 0  ;;  %s1886_s0 = inlined_call_operand.hbm [shape: bf16[8,256], index: 0, kind: input, shape index: {}]   ;;  %s1887_s1 = inlined_call_operand.hbm [shape: bf16[8,128], index: 1, kind: input, shape index: {}]   ;;  %s1888_s2 = inlined_call_operand.hbm [shape: f32[8,128], index: 2, kind: input, shape index: {}]   ;;  %s1889_s3 = inlined_call_operand.hbm [shape: bf16[256,128], index: 3, kind: input, shape index: {}]   ;;  %s1890_s4 = inlined_call_operand.hbm [shape: bf16[128,128], index: 4, kind: input, shape index: {}]   ;;  %s1891_s5 = inlined_call_operand.hbm [shape: bf16[128,256], index: 5, kind: input, shape index: {}]   ;;  %s1892_s6 = inlined_call_operand.hbm [shape: bf16[128,128], index: 6, kind: input, shape index: {}]   ;;  %s1893_s7 = inlined_call_operand.hbm [shape: bf16[128,128], index: 7, kind: input, shape index: {}]   ;;  %s1894_s8 = inlined_call_operand.hbm [shape: bf16[128,128], index: 8, kind: input, shape index: {}]   ;;  %s1895_s9 = inlined_call_operand.vmem [shape: f32[1,768], index: 9, kind: input, shape index: {}]   ;;  %s1896_s10 = inlined_call_operand.hbm [shape: f32[8,128], index: 10, kind: output, shape index: {0}]   ;;  %s1897_s11 = inlined_call_operand.hbm [shape: f32[8,256], index: 11, kind: output, shape index: {1}]   ;;  %s1898_s12 = inlined_call_operand.hbm [shape: f32[8,128], index: 12, kind: output, shape index: {2}]  }
   0x1   :  { %19 = vsyncpa [#allocation6], 0 }
   0x2   :  { %20 = vsyncpa [#allocation9], 0 }
   0x3   :  { %21 = vsyncpa [#allocation12], 0 }
   0x4   :  { %22 = vsyncpa [#allocation15], 0 }
   0x5   :  { %23 = vsyncpa [#allocation4], 0 }
   0x6   :  { %24 = vsyncpa [#allocation19], 0  ;;  %s1581_s21 = smov [#allocation5]   ;;  %s1582_s23 = smov [#allocation8]  }
   0x7   :  { %s41_s22 = sshll.u32 %s1581_s21, 4  ;;  %s60_s24 = sshll.u32 %s1582_s23, 4  ;;  %s42_s22 = int_to_ptr.vmem [resolvable:$true] %s41_s22  ;;  %s1665_s24 = int_to_ptr.vmem [resolvable:$true] %s60_s24 }
   0x8   :  { %s1303_s27 = scalar_lea.hbm %s1887_s1, 64 }
   0x9   :  { %p1304_p0 = scmp.ne.s32.totalorder %s1887_s1, %s1303_s27  ;;  %p1307_p1 = scmp.lt.u32.totalorder %s1303_s27, %s1887_s1 }
   0xb   :  { %p1309_p2 = pnand %p1307_p1, %p1304_p0 }
   0xd   :  { %1312 = shalt.err (!%p1309_p2)
}
   0xe   :  { %s1313_s14 = scalar_lea.vmem %s42_s22, 64  ;;  %p1318_p4 = scmp.lt.s32.totalorder %s42_s22, %s42_s22 }
   0xf   :  { %p1314_p3 = scmp.ne.s32.totalorder %s42_s22, %s1313_s14  ;;  %p1319_p5 = scmp.lt.s32.totalorder %s1313_s14, %s1313_s14 }
  0x11   :  { %p1320_p6 = por %p1319_p5, %p1318_p4 }
  0x13   :  { %p1321_p7 = pnand %p1320_p6, %p1314_p3 }
  0x15   :  { %1324 = shalt.err (!%p1321_p7)
}
  0x16   :  { %44 = dma.hbm_to_vmem [thread:$0]  %s1887_s1, 64, %s42_s22, [#allocation6]  }
  0x17   :  { %s1325_s19 = scalar_lea.hbm %s1889_s3, 2048 }
  0x18   :  { %p1326_p8 = scmp.ne.s32.totalorder %s1889_s3, %s1325_s19  ;;  %p1329_p9 = scmp.lt.u32.totalorder %s1325_s19, %s1889_s3 }
  0x1a   :  { %p1331_p10 = pnand %p1329_p9, %p1326_p8 }
  0x1c   :  { %1334 = shalt.err (!%p1331_p10)
}
  0x1d   :  { %s1335_s26 = scalar_lea.vmem %s1665_s24, 2048  ;;  %p1340_p12 = scmp.lt.s32.totalorder %s1665_s24, %s1665_s24 }
  0x1e   :  { %p1336_p11 = scmp.ne.s32.totalorder %s1665_s24, %s1335_s26  ;;  %p1341_p13 = scmp.lt.s32.totalorder %s1335_s26, %s1335_s26 }
  0x20   :  { %p1342_p0 = por %p1341_p13, %p1340_p12 }
  0x22   :  { %p1343_p1 = pnand %p1342_p0, %p1336_p11 }
  0x24   :  { %1346 = shalt.err (!%p1343_p1)
}
  0x25   :  { %s1583_s1 = smov 64   ;;  %s1584_s22 = smov 4  }
  0x26   :  { %66 = dma.hbm_to_vmem [thread:$0]  %s1889_s3, 2048, %s1665_s24, [#allocation9], %s1583_s1, %s1583_s1, %s1584_s22  }
  0x27   :  { %s1585_s29 = smov [#allocation11]   ;;  %s1347_s15 = scalar_lea.hbm %s1891_s5, 2048 }
  0x28   :  { %s84_s30 = sshll.u32 %s1585_s29, 4  ;;  %p1348_p2 = scmp.ne.s32.totalorder %s1891_s5, %s1347_s15  ;;  %s85_s30 = int_to_ptr.vmem [resolvable:$true] %s84_s30 }
  0x29   :  { %p1351_p3 = scmp.lt.u32.totalorder %s1347_s15, %s1891_s5 }
  0x2b   :  { %p1353_p4 = pnand %p1351_p3, %p1348_p2 }
  0x2d   :  { %1356 = shalt.err (!%p1353_p4)
}
  0x2e   :  { %s1357_s20 = scalar_lea.vmem %s85_s30, 2048  ;;  %p1362_p6 = scmp.lt.s32.totalorder %s85_s30, %s85_s30 }
  0x2f   :  { %p1358_p5 = scmp.ne.s32.totalorder %s85_s30, %s1357_s20  ;;  %p1363_p7 = scmp.lt.s32.totalorder %s1357_s20, %s1357_s20 }
  0x31   :  { %p1364_p8 = por %p1363_p7, %p1362_p6 }
  0x33   :  { %p1365_p9 = pnand %p1364_p8, %p1358_p5 }
  0x35   :  { %1368 = shalt.err (!%p1365_p9)
}
  0x36   :  { %s1586_s3 = smov 128   ;;  %s1587_s24 = smov 8  }
  0x37   :  { %90 = dma.hbm_to_vmem [thread:$0]  %s1891_s5, 2048, %s85_s30, [#allocation12], %s1586_s3, %s1586_s3, %s1587_s24  }
  0x38   :  { %s1588_s25 = smov [#allocation14]   ;;  %s1589_s27 = smov [#allocation2]  }
  0x39   :  { %s108_s26 = sshll.u32 %s1588_s25, 4  ;;  %s31_s28 = sshll.u32 %s1589_s27, 4  ;;  %s109_s26 = int_to_ptr.vmem [resolvable:$true] %s108_s26  ;;  %s32_s28 = int_to_ptr.vmem [resolvable:$true] %s31_s28 }
  0x3a   :  { %s1369_s14 = scalar_lea.hbm %s1893_s7, 1024 }
  0x3b   :  { %p1370_p10 = scmp.ne.s32.totalorder %s1893_s7, %s1369_s14  ;;  %p1373_p11 = scmp.lt.u32.totalorder %s1369_s14, %s1893_s7 }
  0x3d   :  { %p1375_p12 = pnand %p1373_p11, %p1370_p10 }
  0x3f   :  { %1378 = shalt.err (!%p1375_p12)
}
  0x40   :  { %s1379_s5 = scalar_lea.vmem %s109_s26, 1024  ;;  %p1384_p0 = scmp.lt.s32.totalorder %s109_s26, %s109_s26 }
  0x41   :  { %p1380_p13 = scmp.ne.s32.totalorder %s109_s26, %s1379_s5  ;;  %p1385_p1 = scmp.lt.s32.totalorder %s1379_s5, %s1379_s5 }
  0x43   :  { %p1386_p2 = por %p1385_p1, %p1384_p0 }
  0x45   :  { %p1387_p3 = pnand %p1386_p2, %p1380_p13 }
  0x47   :  { %1390 = shalt.err (!%p1387_p3)
}
  0x48   :  { %114 = dma.hbm_to_vmem [thread:$0]  %s1893_s7, 1024, %s109_s26, [#allocation15], %s1583_s1, %s1583_s1, %s1584_s22  }
  0x49   :  { %s1391_s24 = scalar_lea.hbm %s1886_s0, 128 }
  0x4a   :  { %p1392_p4 = scmp.ne.s32.totalorder %s1886_s0, %s1391_s24  ;;  %p1395_p5 = scmp.lt.u32.totalorder %s1391_s24, %s1886_s0 }
  0x4c   :  { %p1397_p6 = pnand %p1395_p5, %p1392_p4 }
  0x4e   :  { %1400 = shalt.err (!%p1397_p6)
}
  0x4f   :  { %s1401_s29 = scalar_lea.vmem %s32_s28, 128  ;;  %p1406_p8 = scmp.lt.s32.totalorder %s32_s28, %s32_s28 }
  0x50   :  { %p1402_p7 = scmp.ne.s32.totalorder %s32_s28, %s1401_s29  ;;  %p1407_p9 = scmp.lt.s32.totalorder %s1401_s29, %s1401_s29 }
  0x52   :  { %p1408_p10 = por %p1407_p9, %p1406_p8 }
  0x54   :  { %p1409_p11 = pnand %p1408_p10, %p1402_p7 }
  0x56   :  { %1412 = shalt.err (!%p1409_p11)
}
  0x57   :  { %34 = dma.hbm_to_vmem [thread:$0]  %s1886_s0, 128, %s32_s28, [#allocation3]  }
  0x58   :  { %s1590_s13 = smov [#allocation7]   ;;  %s1591_s15 = smov [#allocation10]  }
  0x59   :  { %s51_s14 = sshll.u32 %s1590_s13, 4  ;;  %s72_s16 = sshll.u32 %s1591_s15, 4  ;;  %s52_s14 = int_to_ptr.vmem [resolvable:$true] %s51_s14  ;;  %s73_s16 = int_to_ptr.vmem [resolvable:$true] %s72_s16 }
  0x5a   :  { %s1413_s5 = scalar_lea.hbm %s1888_s2, 128 }
  0x5b   :  { %p1414_p12 = scmp.ne.s32.totalorder %s1888_s2, %s1413_s5  ;;  %p1417_p13 = scmp.lt.u32.totalorder %s1413_s5, %s1888_s2 }
  0x5d   :  { %p1419_p0 = pnand %p1417_p13, %p1414_p12 }
  0x5f   :  { %1422 = shalt.err (!%p1419_p0)
}
  0x60   :  { %s1423_s0 = scalar_lea.vmem %s52_s14, 128  ;;  %p1428_p2 = scmp.lt.s32.totalorder %s52_s14, %s52_s14 }
  0x61   :  { %p1424_p1 = scmp.ne.s32.totalorder %s52_s14, %s1423_s0  ;;  %p1429_p3 = scmp.lt.s32.totalorder %s1423_s0, %s1423_s0 }
  0x63   :  { %p1430_p4 = por %p1429_p3, %p1428_p2 }
  0x65   :  { %p1431_p5 = pnand %p1430_p4, %p1424_p1 }
  0x67   :  { %1434 = shalt.err (!%p1431_p5)
}
  0x68   :  { %54 = dma.hbm_to_vmem [thread:$0]  %s1888_s2, 128, %s52_s14, [#allocation6]  }
  0x69   :  { %s1435_s25 = scalar_lea.hbm %s1890_s4, 1024 }
  0x6a   :  { %p1436_p6 = scmp.ne.s32.totalorder %s1890_s4, %s1435_s25  ;;  %p1439_p7 = scmp.lt.u32.totalorder %s1435_s25, %s1890_s4 }
  0x6c   :  { %p1441_p8 = pnand %p1439_p7, %p1436_p6 }
  0x6e   :  { %1444 = shalt.err (!%p1441_p8)
}
  0x6f   :  { %s1445_s13 = scalar_lea.vmem %s73_s16, 1024  ;;  %p1450_p10 = scmp.lt.s32.totalorder %s73_s16, %s73_s16 }
  0x70   :  { %p1446_p9 = scmp.ne.s32.totalorder %s73_s16, %s1445_s13  ;;  %p1451_p11 = scmp.lt.s32.totalorder %s1445_s13, %s1445_s13 }
  0x72   :  { %p1452_p12 = por %p1451_p11, %p1450_p10 }
  0x74   :  { %p1453_p13 = pnand %p1452_p12, %p1446_p9 }
  0x76   :  { %1456 = shalt.err (!%p1453_p13)
}
  0x77   :  { %78 = dma.hbm_to_vmem [thread:$0]  %s1890_s4, 1024, %s73_s16, [#allocation9], %s1583_s1, %s1583_s1, %s1584_s22  }
  0x78   :  { %s1592_s15 = smov [#allocation13]   ;;  %s1593_s18 = smov [#allocation16]  }
  0x79   :  { %s96_s17 = sshll.u32 %s1592_s15, 4  ;;  %s120_s5 = sshll.u32 %s1593_s18, 4  ;;  %s97_s17 = int_to_ptr.vmem [resolvable:$true] %s96_s17  ;;  %s121_s5 = int_to_ptr.vmem [resolvable:$true] %s120_s5 }
  0x7a   :  { %s1457_s20 = scalar_lea.hbm %s1892_s6, 1024 }
  0x7b   :  { %p1458_p0 = scmp.ne.s32.totalorder %s1892_s6, %s1457_s20  ;;  %p1461_p1 = scmp.lt.u32.totalorder %s1457_s20, %s1892_s6 }
  0x7d   :  { %p1463_p2 = pnand %p1461_p1, %p1458_p0 }
  0x7f   :  { %1466 = shalt.err (!%p1463_p2)
}
  0x80   :  { %s1467_s4 = scalar_lea.vmem %s97_s17, 1024  ;;  %p1472_p4 = scmp.lt.s32.totalorder %s97_s17, %s97_s17 }
  0x81   :  { %p1468_p3 = scmp.ne.s32.totalorder %s97_s17, %s1467_s4  ;;  %p1473_p5 = scmp.lt.s32.totalorder %s1467_s4, %s1467_s4 }
  0x83   :  { %p1474_p6 = por %p1473_p5, %p1472_p4 }
  0x85   :  { %p1475_p7 = pnand %p1474_p6, %p1468_p3 }
  0x87   :  { %1478 = shalt.err (!%p1475_p7)
}
  0x88   :  { %102 = dma.hbm_to_vmem [thread:$0]  %s1892_s6, 1024, %s97_s17, [#allocation12], %s1583_s1, %s1583_s1, %s1584_s22  }
  0x89   :  { %s1479_s27 = scalar_lea.hbm %s1894_s8, 1024 }
  0x8a   :  { %p1480_p8 = scmp.ne.s32.totalorder %s1894_s8, %s1479_s27  ;;  %p1483_p9 = scmp.lt.u32.totalorder %s1479_s27, %s1894_s8 }
  0x8c   :  { %p1485_p10 = pnand %p1483_p9, %p1480_p8 }
  0x8e   :  { %1488 = shalt.err (!%p1485_p10)
}
  0x8f   :  { %s1489_s2 = scalar_lea.vmem %s121_s5, 1024  ;;  %p1494_p12 = scmp.lt.s32.totalorder %s121_s5, %s121_s5 }
  0x90   :  { %p1490_p11 = scmp.ne.s32.totalorder %s121_s5, %s1489_s2  ;;  %p1495_p13 = scmp.lt.s32.totalorder %s1489_s2, %s1489_s2 }
  0x92   :  { %p1496_p0 = por %p1495_p13, %p1494_p12 }
  0x94   :  { %p1497_p1 = pnand %p1496_p0, %p1490_p11 }
  0x96   :  { %1500 = shalt.err (!%p1497_p1)
}
  0x97   :  { %126 = dma.hbm_to_vmem [thread:$0]  %s1894_s8, 1024, %s121_s5, [#allocation15], %s1583_s1, %s1583_s1, %s1584_s22  }
  0x98   :  { %1567 = dma.done.wait [#allocation3], 128  }
  0x99   :  { %1568 = vsyncadd [#allocation3], 4294967168 }
  0x9a   :  { %1569 = dma.done.wait [#allocation6], 192  }
  0x9b   :  { %1570 = vsyncadd [#allocation6], 4294967104 }
  0x9c   :  { %1571 = dma.done.wait [#allocation9], 3072  }
  0x9d   :  { %1572 = vsyncadd [#allocation9], 4294964224 }
  0x9e   :  { %1573 = dma.done.wait [#allocation12], 3072  }
  0x9f   :  { %1574 = vsyncadd [#allocation12], 4294964224 }
  0xa0   :  { %1575 = dma.done.wait [#allocation15], 2048  }
  0xa1   :  { %1576 = vsyncadd [#allocation15], 4294965248  ;;  %v1594_v0 = vmov 0.0   ;;  %v1223_v1 = vld [vmem:[#allocation8 + $0x40] sm:$0xff]   ;;  %v1225_v3 = vld [vmem:[#allocation8 + $0x48] sm:$0xff]   ;;  %vm1595_vm0 = vmmov 0  }
  0xa2   :  { %1124 = vmatprep.subr.bf16.mxu1 %v1594_v0  ;;  %v1224_v2 = vld [vmem:[#allocation8] sm:$0xff]   ;;  %1066 = vmatprep.subr.bf16.mxu0 %v1223_v1  ;;  %v1226_v4 = vld [vmem:[#allocation8 + $0x8] sm:$0xff]   ;;  %v1227_v5 = vld [vmem:[#allocation8 + $0x50] sm:$0xff]   ;;  %v1596_v53 = vmov 0   ;;  %s1597_s19 = smov [#allocation18]  }
  0xa3   :  { %1067 = vmatpush3.bf16.msra.mxu0 %v1224_v2  ;;  %v1228_v6 = vld [vmem:[#allocation8 + $0x10] sm:$0xff]   ;;  %v1229_v7 = vld [vmem:[#allocation8 + $0x58] sm:$0xff]   ;;  %v1231_v9 = vld [vmem:[#allocation8 + $0x60] sm:$0xff]   ;;  %1140 = vmatprep.mubr.msk.bf16.mxu1 %vm1595_vm0, %v1594_v0  ;;  %s966_s20 = sshll.u32 %s1597_s19, 4  ;;  %s967_s20 = int_to_ptr.vmem [resolvable:$true] %s966_s20 }
  0xa4   :  { %1068 = vmatprep.subr.bf16.mxu0 %v1225_v3  ;;  %v1230_v8 = vld [vmem:[#allocation8 + $0x18] sm:$0xff]   ;;  %v1232_v10 = vld [vmem:[#allocation8 + $0x20] sm:$0xff]   ;;  %v1233_v11 = vld [vmem:[#allocation8 + $0x68] sm:$0xff]   ;;  %s1501_s3 = scalar_lea.vmem %s967_s20, 256  ;;  %p1506_p3 = scmp.lt.s32.totalorder %s967_s20, %s967_s20 }
  0xa5   :  { %v157_v12 = vld [vmem:[#allocation2] sm:$0xff]  ;;  %v1241_v14 = vld [vmem:[#allocation10] sm:$0xff]   ;;  %v1237_v19 = vld [vmem:[#allocation8 + $0x78] sm:$0xff]   ;;  %p1502_p2 = scmp.ne.s32.totalorder %s967_s20, %s1501_s3  ;;  %p1507_p4 = scmp.lt.s32.totalorder %s1501_s3, %s1501_s3 }
  0xa6   :  { %v998_v13 = vcombine.high %v157_v12, %v157_v12  ;;  %v1234_v15 = vld [vmem:[#allocation8 + $0x28] sm:$0xff]   ;;  %v1235_v16 = vld [vmem:[#allocation8 + $0x70] sm:$0xff]   ;;  %1125 = vmatpush3.bf16.msra.mxu1 %v1241_v14  ;;  %v1238_v21 = vld [vmem:[#allocation8 + $0x38] sm:$0xff]   ;;  %v997_v23 = vcombine.low %v157_v12, %v157_v12 }
  0xa7   :  { %1069 = vmatpush3.bf16.msra.mxu0 %v1226_v4  ;;  %v1242_v17 = vld [vmem:[#allocation10 + $0x8] sm:$0xff]   ;;  %v1236_v18 = vld [vmem:[#allocation8 + $0x30] sm:$0xff]   ;;  %1126 = vmatprep.subr.bf16.mxu1 %v1594_v0  ;;  %v1244_v22 = vld [vmem:[#allocation10 + $0x18] sm:$0xff]   ;;  %p1508_p5 = por %p1507_p4, %p1506_p3 }
  0xa8   :  { %1070 = vmatprep.subr.bf16.mxu0 %v1227_v5  ;;  %332 = vmatprep.mubr.bf16.mxu0 %v998_v13  ;;  %v1243_v20 = vld [vmem:[#allocation10 + $0x10] sm:$0xff]   ;;  %v1245_v24 = vld [vmem:[#allocation10 + $0x20] sm:$0xff]   ;;  %v1246_v25 = vld [vmem:[#allocation10 + $0x28] sm:$0xff]  }
  0xa9   :  { %v1247_v26 = vld [vmem:[#allocation10 + $0x30] sm:$0xff]   ;;  %v1248_v27 = vld [vmem:[#allocation10 + $0x38] sm:$0xff]   ;;  %v1249_v28 = vld [vmem:[#allocation11] ss:$8 sps:$4 sm:$0xff]   ;;  %p1509_p6 = pnand %p1508_p5, %p1502_p2 }
  0xaa   :  { %1127 = vmatpush3.bf16.msra.mxu1 %v1242_v17  ;;  %v1251_v29 = vld [vmem:[#allocation11 + $0x4] ss:$8 sps:$4 sm:$0xff]   ;;  %v1254_v30 = vld [vmem:[#allocation11 + $0x14] ss:$8 sps:$4 sm:$0xff]   ;;  %v1252_v31 = vld [vmem:[#allocation11 + $0x10] ss:$8 sps:$4 sm:$0xff]  }
  0xab   :  { %1071 = vmatpush3.bf16.msra.mxu0 %v1228_v6  ;;  %1128 = vmatprep.subr.bf16.mxu1 %v1594_v0  ;;  %v1257_v32 = vld [vmem:[#allocation11 + $0x24] ss:$8 sps:$4 sm:$0xff]   ;;  %v1255_v33 = vld [vmem:[#allocation11 + $0x20] ss:$8 sps:$4 sm:$0xff]   ;;  %v1260_v34 = vld [vmem:[#allocation11 + $0x34] ss:$8 sps:$4 sm:$0xff]  }
  0xac   :  { %1072 = vmatprep.subr.bf16.mxu0 %v1229_v7  ;;  %v1258_v35 = vld [vmem:[#allocation11 + $0x30] ss:$8 sps:$4 sm:$0xff]   ;;  %v1263_v36 = vld [vmem:[#allocation11 + $0x44] ss:$8 sps:$4 sm:$0xff]   ;;  %v1261_v37 = vld [vmem:[#allocation11 + $0x40] ss:$8 sps:$4 sm:$0xff]  }
  0xad   :  { %v1266_v38 = vld [vmem:[#allocation11 + $0x54] ss:$8 sps:$4 sm:$0xff]   ;;  %v1264_v39 = vld [vmem:[#allocation11 + $0x50] ss:$8 sps:$4 sm:$0xff]   ;;  %v1269_v40 = vld [vmem:[#allocation11 + $0x64] ss:$8 sps:$4 sm:$0xff]  }
  0xae   :  { %1129 = vmatpush3.bf16.msra.mxu1 %v1243_v20  ;;  %v1267_v41 = vld [vmem:[#allocation11 + $0x60] ss:$8 sps:$4 sm:$0xff]   ;;  %v996_v43 = vld [vmem:[%s1895_s9] ss:$0 sm:$0xff]  ;;  %v1272_v51 = vld [vmem:[#allocation11 + $0x74] ss:$8 sps:$4 sm:$0xff]  }
  0xaf   :  { %1073 = vmatpush3.bf16.msra.mxu0 %v1230_v8  ;;  %1130 = vmatprep.subr.bf16.mxu1 %v1594_v0  ;;  %v1270_v52 = vld [vmem:[#allocation11 + $0x70] ss:$8 sps:$4 sm:$0xff]   ;;  %v1273_v54 = vld [vmem:[#allocation14] sm:$0xff]   ;;  %v1275_v55 = vld [vmem:[#allocation14 + $0x8] sm:$0xff]  }
  0xb0   :  { %1074 = vmatprep.subr.bf16.mxu0 %v1231_v9  ;;  %v1277_v56 = vld [vmem:[#allocation14 + $0x10] sm:$0xff]   ;;  %v1015_v57 = vld [vmem:[%s1895_s9 + $0x1] ss:$0 sm:$0xff]  ;;  %v1274_v1 = vld [vmem:[#allocation13] sm:$0xff]  }
  0xb1   :  { %v1276_v3 = vld [vmem:[#allocation13 + $0x8] sm:$0xff]   ;;  %v1278_v4 = vld [vmem:[#allocation13 + $0x10] sm:$0xff]   ;;  %v1279_v5 = vld [vmem:[#allocation14 + $0x18] sm:$0xff]  }
  0xb2   :  { %1131 = vmatpush3.bf16.msra.mxu1 %v1244_v22  ;;  %v1280_v6 = vld [vmem:[#allocation13 + $0x18] sm:$0xff]   ;;  %v1281_v7 = vld [vmem:[#allocation14 + $0x20] sm:$0xff]   ;;  %v1283_v9 = vld [vmem:[#allocation14 + $0x28] sm:$0xff]   ;;  %v473_v22 = vlaneseq }
  0xb3   :  { %1075 = vmatpush3.bf16.msra.mxu0 %v1232_v10  ;;  %1132 = vmatprep.subr.bf16.mxu1 %v1594_v0  ;;  %v1282_v8 = vld [vmem:[#allocation13 + $0x20] sm:$0xff]   ;;  %v1284_v10 = vld [vmem:[#allocation13 + $0x28] sm:$0xff]   ;;  %v1286_v12 = vld [vmem:[#allocation13 + $0x30] sm:$0xff]  }
  0xb4   :  { %1076 = vmatprep.subr.bf16.mxu0 %v1233_v11  ;;  %v1285_v11 = vld [vmem:[#allocation14 + $0x30] sm:$0xff]   ;;  %v1287_v13 = vld [vmem:[#allocation14 + $0x38] sm:$0xff]   ;;  %v1290_v17 = vld [vmem:[#allocation16 + $0x8] sm:$0xff]  }
  0xb5   :  { %v1288_v14 = vld [vmem:[#allocation13 + $0x38] sm:$0xff]   ;;  %v1293_v20 = vld [vmem:[#allocation16 + $0x20] sm:$0xff]  }
  0xb6   :  { %1133 = vmatpush3.bf16.msra.mxu1 %v1245_v24 }
  0xb7   :  { %1077 = vmatpush3.bf16.msra.mxu0 %v1234_v15  ;;  %1134 = vmatprep.subr.bf16.mxu1 %v1594_v0  ;;  %v630_v15 = vld [vmem:[#allocation5] sm:$0xf] }
  0xb8   :  { %1078 = vmatprep.subr.bf16.mxu0 %v1235_v16  ;;  %v1289_v16 = vld [vmem:[#allocation16] sm:$0xff]  }
  0xba   :  { %1135 = vmatpush3.bf16.msra.mxu1 %v1246_v25  ;;  %v471_v25 = vld [vmem:[%s1895_s9 + $0x2] sm:$0x3] }
  0xbb   :  { %1079 = vmatpush3.bf16.msra.mxu0 %v1236_v18  ;;  %1136 = vmatprep.subr.bf16.mxu1 %v1594_v0  ;;  %v1291_v18 = vld [vmem:[#allocation16 + $0x10] sm:$0xff]  }
  0xbc   :  { %1080 = vmatprep.subr.bf16.mxu0 %v1237_v19  ;;  %v1292_v19 = vld [vmem:[#allocation16 + $0x18] sm:$0xff]  }
  0xbe   :  { %1137 = vmatpush3.bf16.msra.mxu1 %v1247_v26 }
  0xbf   :  { %1081 = vmatpush3.bf16.msra.mxu0 %v1238_v21  ;;  %1138 = vmatprep.subr.bf16.mxu1 %v1594_v0  ;;  %v1294_v21 = vld [vmem:[#allocation16 + $0x28] sm:$0xff]  }
  0xc0   :  { %563 = vmatprep.subr.bf16.mxu0 %v1251_v29 }
  0xc2   :  { %333 = vmatmul.mubr.bf16.vlgmr.msra.gmra.mrb[0].mxu0 %v997_v23  ;;  %1139 = vmatpush3.bf16.msra.mxu1 %v1248_v27  ;;  %v474_v23 = vshrl.u32 %v473_v22, 7 }
  0xc3   :  { %1144 = vmatprep.subr.bf16.mxu1 %v1594_v0  ;;  %564 = vmatpush1.bf16.msra.mxu0 %v1249_v28 }
  0xc4   :  { %565 = vmatprep.subr.bf16.mxu0 %v1254_v30  ;;  %595 = vmatprep.mubr.bf16.mxu0 %v1596_v53  ;;  %v475_v24 = vsub.s32 0, %v474_v23  ;;  %v479_v26 = vsub.s32 1, %v474_v23 }
  0xc6   :  { %v476_v27 = vrot.slane %v471_v25, %v475_v24  ;;  %v480_v28 = vrot.slane %v471_v25, %v479_v26 }
  0xc7   :  { %566 = vmatpush1.bf16.msra.mxu0 %v1252_v31 }
  0xc8   :  { %567 = vmatprep.subr.bf16.mxu0 %v1257_v32 }
  0xcb   :  { %568 = vmatpush1.bf16.msra.mxu0 %v1255_v33 }
  0xcc   :  { %569 = vmatprep.subr.bf16.mxu0 %v1260_v34 }
  0xcf   :  { %570 = vmatpush1.bf16.msra.mxu0 %v1258_v35 }
  0xd0   :  { %571 = vmatprep.subr.bf16.mxu0 %v1263_v36 }
  0xd3   :  { %572 = vmatpush1.bf16.msra.mxu0 %v1261_v37  ;;  %v606_v37 = vld [vmem:[#allocation7] sm:$0xff] }
  0xd4   :  { %573 = vmatprep.subr.bf16.mxu0 %v1266_v38 }
  0xd7   :  { %574 = vmatpush1.bf16.msra.mxu0 %v1264_v39 }
  0xd8   :  { %575 = vmatprep.subr.bf16.mxu0 %v1269_v40 }
  0xdb   :  { %576 = vmatpush1.bf16.msra.mxu0 %v1267_v41 }
  0xdc   :  { %577 = vmatprep.subr.bf16.mxu0 %v1272_v51 }
  0xdf   :  { %578 = vmatpush1.bf16.msra.mxu0 %v1270_v52 }
  0xe0   :  { %1164 = vmatprep.subr.bf16.mxu0 %v1594_v0 }
 0x195   :  { %v1082_v42 = vpop.f32.mrb[0].mxu0 }
 0x196   :  { %v1083_v44 = vpop.f32.mrb[1].mxu0 }
 0x197   :  { %v1084_v45 = vadd.f32 %v1083_v44, %v1082_v42  ;;  %v1085_v46 = vpop.f32.mrb[2].mxu0 }
 0x198   :  { %v1086_v47 = vpop.f32.mrb[3].mxu0  ;;  %v1295_v46 = vld [vmem:[#allocation16 + $0x30] sm:$0xff]  }
 0x199   :  { %v335_v48 = vadd.f32 %v1084_v45, %v996_v43  ;;  %v1296_v47 = vld [vmem:[#allocation16 + $0x38] sm:$0xff]  }
 0x19b   :  { %v340_v49 = vmax.f32 %v335_v48, 0.0 }
 0x19d   :  { %v341_v50 = vpack.c.bf16 %v340_v49, %v340_v49  ;;  %v1056_v49 = vld [vmem:[%s1895_s9 + $0x4] ss:$0 sm:$0xff] }
 0x19f   :  { %1141 = vmatmul.mubr.bf16.vlgmr.msra.gmra.mrb[0].mxu1 %v341_v50 }
 0x1a0   :  { %1160 = vmatprep.mubr.msk.bf16.mxu1 %vm1595_vm0, %v1594_v0  ;;  %1145 = vmatpush3.bf16.msra.mxu1 %v1273_v54 }
 0x1a1   :  { %1146 = vmatprep.subr.bf16.mxu1 %v1594_v0 }
 0x1a4   :  { %1147 = vmatpush3.bf16.msra.mxu1 %v1275_v55 }
 0x1a5   :  { %1148 = vmatprep.subr.bf16.mxu1 %v1594_v0 }
 0x1a8   :  { %1149 = vmatpush3.bf16.msra.mxu1 %v1277_v56 }
 0x1a9   :  { %1150 = vmatprep.subr.bf16.mxu1 %v1594_v0 }
 0x1ac   :  { %1151 = vmatpush3.bf16.msra.mxu1 %v1279_v5 }
 0x1ad   :  { %1152 = vmatprep.subr.bf16.mxu1 %v1594_v0 }
 0x1b0   :  { %1153 = vmatpush3.bf16.msra.mxu1 %v1281_v7 }
 0x1b1   :  { %1154 = vmatprep.subr.bf16.mxu1 %v1594_v0 }
 0x1b4   :  { %1155 = vmatpush3.bf16.msra.mxu1 %v1283_v9 }
 0x1b5   :  { %1156 = vmatprep.subr.bf16.mxu1 %v1594_v0 }
 0x1b8   :  { %1157 = vmatpush3.bf16.msra.mxu1 %v1285_v11 }
 0x1b9   :  { %1158 = vmatprep.subr.bf16.mxu1 %v1594_v0 }
 0x1bc   :  { %1159 = vmatpush3.bf16.msra.mxu1 %v1287_v13 }
 0x1bd   :  { %1184 = vmatprep.subr.bf16.mxu1 %v1594_v0 }
 0x1bf   :  { %1161 = vmatmul.mubr.bf16.vlgmr.msra.gmra.mrb[4].mxu1 %v630_v15 }
 0x1c0   :  { %1200 = vmatprep.mubr.msk.bf16.mxu1 %vm1595_vm0, %v1594_v0  ;;  %1185 = vmatpush3.bf16.msra.mxu1 %v1289_v16 }
 0x1c1   :  { %1186 = vmatprep.subr.bf16.mxu1 %v1594_v0 }
 0x1c4   :  { %1187 = vmatpush3.bf16.msra.mxu1 %v1290_v17 }
 0x1c5   :  { %1188 = vmatprep.subr.bf16.mxu1 %v1594_v0 }
 0x1c8   :  { %1189 = vmatpush3.bf16.msra.mxu1 %v1291_v18 }
 0x1c9   :  { %1190 = vmatprep.subr.bf16.mxu1 %v1594_v0 }
 0x1cc   :  { %1191 = vmatpush3.bf16.msra.mxu1 %v1292_v19 }
 0x1cd   :  { %1192 = vmatprep.subr.bf16.mxu1 %v1594_v0 }
 0x1d0   :  { %1193 = vmatpush3.bf16.msra.mxu1 %v1293_v20 }
 0x1d1   :  { %1194 = vmatprep.subr.bf16.mxu1 %v1594_v0 }
 0x1d4   :  { %1195 = vmatpush3.bf16.msra.mxu1 %v1294_v21 }
 0x1d5   :  { %1196 = vmatprep.subr.bf16.mxu1 %v1594_v0 }
 0x1d8   :  { %1197 = vmatpush3.bf16.msra.mxu1 %v1295_v46 }
 0x1d9   :  { %1198 = vmatprep.subr.bf16.mxu1 %v1594_v0 }
 0x1dc   :  { %1199 = vmatpush3.bf16.msra.mxu1 %v1296_v47 }
 0x272   :  { %v447_v58 = vpop.f32.mrb[0].mxu1 }
 0x273   :  { %v448_v59 = vadd.f32 %v1015_v57, %v447_v58  ;;  %v1142_v60 = vpop.f32.mrb[1].mxu1 }
 0x274   :  { %v450_v61 = vpop.f32.mrb[2].mxu1 }
 0x275   :  { %v453_v62 = vmax.f32 %v448_v59, 0.0  ;;  %v1143_v63 = vpop.f32.mrb[3].mxu1 }
 0x277   :  { %v454_v2 = vpack.c.bf16 %v453_v62, %v453_v62 }
 0x279   :  { %596 = vmatmul.mubr.bf16.vlgmr.msra.gmra.mrb[4].mxu0 %v454_v2 }
 0x27a   :  { %1165 = vmatpush3.bf16.msra.mxu0 %v1274_v1  ;;  %1180 = vmatprep.mubr.msk.bf16.mxu0 %vm1595_vm0, %v1594_v0 }
 0x27b   :  { %1166 = vmatprep.subr.bf16.mxu0 %v1594_v0 }
 0x27e   :  { %1167 = vmatpush3.bf16.msra.mxu0 %v1276_v3 }
 0x27f   :  { %1168 = vmatprep.subr.bf16.mxu0 %v1594_v0 }
 0x282   :  { %1169 = vmatpush3.bf16.msra.mxu0 %v1278_v4 }
 0x283   :  { %1170 = vmatprep.subr.bf16.mxu0 %v1594_v0 }
 0x286   :  { %1171 = vmatpush3.bf16.msra.mxu0 %v1280_v6 }
 0x287   :  { %1172 = vmatprep.subr.bf16.mxu0 %v1594_v0 }
 0x28a   :  { %1173 = vmatpush3.bf16.msra.mxu0 %v1282_v8 }
 0x28b   :  { %1174 = vmatprep.subr.bf16.mxu0 %v1594_v0 }
 0x28e   :  { %1175 = vmatpush3.bf16.msra.mxu0 %v1284_v10 }
 0x28f   :  { %1176 = vmatprep.subr.bf16.mxu0 %v1594_v0 }
 0x292   :  { %1177 = vmatpush3.bf16.msra.mxu0 %v1286_v12  ;;  %v729_v42 = vpop.f32.mrb[4].mxu1 }
 0x293   :  { %1178 = vmatprep.subr.bf16.mxu0 %v1594_v0  ;;  %v1162_v43 = vpop.f32.mrb[5].mxu1 }
 0x294   :  { %v732_v44 = vpop.f32.mrb[6].mxu1 }
 0x295   :  { %v1163_v45 = vpop.f32.mrb[7].mxu1 }
 0x296   :  { %1179 = vmatpush3.bf16.msra.mxu0 %v1288_v14 }
 0x34c   :  { %v597_v29 = vpop.f32.mrb[4].mxu0 }
 0x34d   :  { %v598_v30 = vadd.f32 %v597_v29, %v476_v27  ;;  %v599_v31 = vpop.f32.mrb[5].mxu0 }
 0x34e   :  { %v600_v32 = vadd.f32 %v599_v31, %v480_v28  ;;  %v601_v33 = vpop.f32.mrb[6].mxu0 }
 0x34f   :  { %604 = vst [vmem:[#allocation18] sm:$0xff] %v598_v30  ;;  %v602_v34 = vpop.f32.mrb[7].mxu0 }
 0x350   :  { %605 = vst [vmem:[#allocation18 + $0x8] sm:$0xff] %v600_v32  ;;  %v607_v35 = vmul.f32 0.5, %v600_v32 }
 0x352   :  { %v608_v36 = vmul.f32 1.442695, %v607_v35 }
 0x354   :  { %1297 = vpow2.f32 %v608_v36 }
 0x35e   :  { %v1298_v38 = vpop.eup %1297 }
 0x35f   :  { %v610_v39 = vmul.f32 %v1298_v38, %v606_v37 }
 0x361   :  { %v611_v40 = vadd.f32 %v610_v39, %v598_v30 }
 0x363   :  { %v613_v41 = vpack.c.bf16 %v611_v40, %v611_v40  ;;  %612 = vst [vmem:[#allocation20] sm:$0xff] %v611_v40 }
 0x365   :  { %1181 = vmatmul.mubr.bf16.vlgmr.msra.gmra.mrb[8].mxu0 %v613_v41 }
 0x438   :  { %v817_v48 = vpop.f32.mrb[8].mxu0 }
 0x439   :  { %v818_v50 = vadd.f32 %v817_v48, %v729_v42  ;;  %v1182_v51 = vpop.f32.mrb[9].mxu0 }
 0x43a   :  { %v820_v52 = vpop.f32.mrb[10].mxu0 }
 0x43b   :  { %v830_v53 = vadd.f32 %v1056_v49, %v818_v50  ;;  %v1183_v54 = vpop.f32.mrb[11].mxu0 }
 0x43d   :  { %v831_v55 = vmax.f32 %v830_v53, 0.0 }
 0x43f   :  { %v832_v56 = vpack.c.bf16 %v831_v55, %v831_v55 }
 0x441   :  { %1201 = vmatmul.mubr.bf16.vlgmr.msra.gmra.mrb[8].mxu1 %v832_v56 }
 0x442   :  { %1512 = shalt.err (!%p1509_p6)
}
 0x443   :  { %s1513_s24 = scalar_lea.hbm %s1897_s11, 256 }
 0x444   :  { %p1514_p7 = scmp.ne.s32.totalorder %s1897_s11, %s1513_s24  ;;  %p1517_p8 = scmp.lt.u32.totalorder %s1513_s24, %s1897_s11 }
 0x446   :  { %p1519_p9 = pnand %p1517_p8, %p1514_p7 }
 0x448   :  { %1522 = shalt.err (!%p1519_p9)
}
 0x449   :  { %969 = dma.vmem_to_hbm [thread:$0]  %s967_s20, 256, %s1897_s11, [#allocation19]  }
 0x44a   :  { %s1598_s29 = smov [#allocation20]  }
 0x44b   :  { %s976_s7 = sshll.u32 %s1598_s29, 4  ;;  %s977_s7 = int_to_ptr.vmem [resolvable:$true] %s976_s7 }
 0x44c   :  { %s1523_s26 = scalar_lea.vmem %s977_s7, 128  ;;  %p1528_p11 = scmp.lt.s32.totalorder %s977_s7, %s977_s7 }
 0x44d   :  { %p1524_p10 = scmp.ne.s32.totalorder %s977_s7, %s1523_s26  ;;  %p1529_p12 = scmp.lt.s32.totalorder %s1523_s26, %s1523_s26 }
 0x44f   :  { %p1530_p13 = por %p1529_p12, %p1528_p11 }
 0x451   :  { %p1531_p0 = pnand %p1530_p13, %p1524_p10 }
 0x453   :  { %1534 = shalt.err (!%p1531_p0)
}
 0x454   :  { %s1535_s6 = scalar_lea.hbm %s1898_s12, 128 }
 0x455   :  { %p1536_p1 = scmp.ne.s32.totalorder %s1898_s12, %s1535_s6  ;;  %p1539_p2 = scmp.lt.u32.totalorder %s1535_s6, %s1898_s12 }
 0x457   :  { %p1541_p3 = pnand %p1539_p2, %p1536_p1 }
 0x459   :  { %1544 = shalt.err (!%p1541_p3)
}
 0x45a   :  { %979 = dma.vmem_to_hbm [thread:$0]  %s977_s7, 128, %s1898_s12, [#allocation19]   ;;  %v1057_v0 = vld [vmem:[%s1895_s9 + $0x5] ss:$0 sm:$0xff] }
 0x45b   :  { %s1599_s5 = smov [#allocation17]  }
 0x45c   :  { %s956_s30 = sshll.u32 %s1599_s5, 4  ;;  %s957_s30 = int_to_ptr.vmem [resolvable:$true] %s956_s30 }
 0x45d   :  { %s1545_s12 = scalar_lea.vmem %s957_s30, 128  ;;  %p1550_p5 = scmp.lt.s32.totalorder %s957_s30, %s957_s30 }
 0x45e   :  { %p1546_p4 = scmp.ne.s32.totalorder %s957_s30, %s1545_s12  ;;  %p1551_p6 = scmp.lt.s32.totalorder %s1545_s12, %s1545_s12 }
 0x460   :  { %p1552_p7 = por %p1551_p6, %p1550_p5 }
 0x462   :  { %p1553_p8 = pnand %p1552_p7, %p1546_p4 }
 0x514   :  { %v938_v57 = vpop.f32.mrb[8].mxu1 }
 0x515   :  { %v939_v58 = vadd.f32 %v1057_v0, %v938_v57  ;;  %v1202_v59 = vpop.f32.mrb[9].mxu1 }
 0x516   :  { %v941_v60 = vpop.f32.mrb[10].mxu1 }
 0x517   :  { %v944_v61 = vsub.f32 0.0, %v939_v58  ;;  %v1203_v62 = vpop.f32.mrb[11].mxu1 }
 0x519   :  { %v945_v63 = vmul.f32 1.442695, %v944_v61 }
 0x51b   :  { %1299 = vpow2.f32 %v945_v63 }
 0x525   :  { %v1300_v1 = vpop.eup %1299 }
 0x526   :  { %v947_v2 = vadd.f32 1.0, %v1300_v1 }
 0x528   :  { %1301 = vrcp.f32 %v947_v2 }
 0x532   :  { %v1302_v3 = vpop.eup %1301 }
 0x533   :  { %949 = vst [vmem:[#allocation17] sm:$0xff] %v1302_v3 }
 0x534   :  { %1556 = shalt.err (!%p1553_p8)
}
 0x535   :  { %s1557_s20 = scalar_lea.hbm %s1896_s10, 128 }
 0x536   :  { %p1558_p9 = scmp.ne.s32.totalorder %s1896_s10, %s1557_s20  ;;  %p1561_p10 = scmp.lt.u32.totalorder %s1557_s20, %s1896_s10 }
 0x538   :  { %p1563_p11 = pnand %p1561_p10, %p1558_p9 }
 0x53a   :  { %1566 = shalt.err (!%p1563_p11)
}
 0x53b   :  { %959 = dma.vmem_to_hbm [thread:$0]  %s957_s30, 128, %s1896_s10, [#allocation4]  }
 0x53c   :  { %1577 = dma.done.wait [#allocation4], 128  }
 0x53d   :  { %1578 = vsyncadd [#allocation4], 4294967168 }
 0x53e   :  { %1579 = dma.done.wait [#allocation19], 384  }
 0x53f   :  { %1580 = vsyncadd [#allocation19], 4294966912 }
 0x540   :  { %989 = vsyncpa [#allocation3], 1 }
 0x541   :  { %990 = vsyncpa [#allocation6], 1 }
 0x542   :  { %991 = vsyncpa [#allocation9], 1 }
 0x543   :  { %992 = vsyncpa [#allocation12], 1 }
 0x544   :  { %993 = vsyncpa [#allocation15], 1 }
 0x545   :  { %994 = vsyncpa [#allocation4], 1 }
 0x546   :  { %995 = vsyncpa [#allocation19], 1 }

</bundles_post_ra>
